<compile_context>
chip_gen: v6e
topology: v6e:2x2x1
jax: 0.10.0
libtpu: 0.0.40
codegen_flags: <defaults>
</compile_context>

<pallas_src>
import functools

import jax
import jax.numpy as jnp
from jax import lax
from jax.experimental import pallas as pl
from jax.experimental.pallas import tpu as pltpu


def _reflect_pad_axis(a, axis, pad):
    """ReflectionPad (torch/jnp 'reflect', no edge repeat) along `axis`."""
    n = a.shape[axis]
    parts = []
    for i in range(pad, 0, -1):                      # left halo: a[pad], ..., a[1]
        parts.append(lax.slice_in_dim(a, i, i + 1, axis=axis))
    parts.append(a)
    for i in range(n - 2, n - 2 - pad, -1):          # right halo: a[n-2], ..., a[n-1-pad]
        parts.append(lax.slice_in_dim(a, i, i + 1, axis=axis))
    return jnp.concatenate(parts, axis=axis)


def _window_sum_axis(a, axis, out_len, size):
    """Sum of `size` consecutive elements (stride 1) along `axis`."""
    acc = lax.slice_in_dim(a, 0, out_len, axis=axis)
    for j in range(1, size):
        acc = acc + lax.slice_in_dim(a, j, j + out_len, axis=axis)
    return acc


def _rgem_kernel(x_ref, o_ref, *, pr, size):
    # x_ref / o_ref: (1, H, W, CBLK) NHWC tile, channels lane-dense.
    H, W = x_ref.shape[1], x_ref.shape[2]
    pad = (size - 1) // 2
    k2 = float(size * size)

    xf = x_ref[0].astype(jnp.float32)                     # (H, W, C), compute in f32

    # x ** pr.  For pr=2.5 use x*x*sqrt(x): one EUP push instead of exp+log, with the
    # same NaN behavior for negative inputs as torch.pow.
    if float(pr) == 2.5:
        powed = xf * xf * jnp.sqrt(xf)
    else:
        powed = jnp.power(xf, pr)

    # Separable (size x size) box sum with the reflection halo rebuilt in-kernel.
    # H axis first: leading-dim slices are plain vreg addressing (no sublane shuffles);
    # only the second (W) pass pays sublane-offset slices.
    ph = _reflect_pad_axis(powed, axis=0, pad=pad)                 # (H+2p, W, C)
    rows = _window_sum_axis(ph, axis=0, out_len=H, size=size)      # (H, W, C)
    pw = _reflect_pad_axis(rows, axis=1, pad=pad)                  # (H, W+2p, C)
    ssum = _window_sum_axis(pw, axis=1, out_len=W, size=size)      # (H, W, C)

    # LPPool algebra: with the /nominater pre-scale (nom**pr == k2),
    #   sign(avg)*relu(|avg|)*k2 == sum((x/nom)**pr) == ssum / k2,
    # so pooled == (ssum / k2) ** (1/pr).
    pooled = jnp.power(ssum * (1.0 / k2), 1.0 / pr)

    o_ref[0] = (0.5 * (pooled + xf)).astype(o_ref.dtype)


def _pick_cblk(C, H, W, budget_bytes=1 << 20):
    """Largest channel block satisfying the lane rule (multiple of 128, or full C when C
    is not 128-divisible) whose f32 tile stays under ~1 MiB (safe for v7x's 64 MiB VMEM
    once double-buffered I/O and in-kernel f32 intermediates are counted)."""
    if C % 128 != 0:
        # Lane rule forces the full channel extent; fine for the small-C case.
        return C
    best = 128
    c = 128
    while c <= C:
        if C % c == 0 and c * H * W * 4 <= budget_bytes:
            best = c
        c += 128
    return best


def rgem(x, pr=2.5, size=5):
    """x: (N, C, H, W) float array. Same shape/dtype/semantics as PyTorch rgem.forward."""
    N, C, H, W = x.shape
    cblk = _pick_cblk(C, H, W)

    # NHWC so channels are lane-dense; the 5x5 window shifts then only move along
    # sublane / leading axes.  The transposes are layout glue outside the kernel.
    x_nhwc = jnp.transpose(x, (0, 2, 3, 1))

    kernel = functools.partial(_rgem_kernel, pr=pr, size=size)

    out_nhwc = pl.pallas_call(
        kernel,
        out_shape=jax.ShapeDtypeStruct((N, H, W, C), x.dtype),
        grid_spec=pltpu.PrefetchScalarGridSpec(
            num_scalar_prefetch=0,
            grid=(N, C // cblk),
            in_specs=[pl.BlockSpec((1, H, W, cblk), lambda n, c: (n, 0, 0, c))],
            out_specs=pl.BlockSpec((1, H, W, cblk), lambda n, c: (n, 0, 0, c)),
        ),
        compiler_params=pltpu.CompilerParams(
            dimension_semantics=("parallel", "parallel"),
            vmem_limit_bytes=32 * 1024 * 1024,
        ),
    )(x_nhwc)

    return jnp.transpose(out_nhwc, (0, 3, 1, 2))


def _rgem_ref(x, pr=2.5, size=5):
    """Pure-JAX reference matching the PyTorch forward literally."""
    pad = int((size - 1) // 2.0)
    nominater = (size ** 2) ** (1.0 / pr)
    xp = jnp.pad(x / nominater, ((0, 0), (0, 0), (pad, pad), (pad, pad)),
                 mode="reflect")
    powed = jnp.power(xp, pr)
    N, C, H, W = x.shape
    acc = jnp.zeros((N, C, H, W), dtype=jnp.float32)
    for i in range(size):
        for j in range(size):
            acc = acc + powed[:, :, i:i + H, j:j + W]
    k2 = float(size * size)
    avg = acc / k2
    pooled = jnp.power(jnp.sign(avg) * jnp.maximum(jnp.abs(avg), 0.0) * k2,
                       1.0 / pr)
    return (0.5 * pooled + 0.5 * x).astype(x.dtype)


if __name__ == "__main__":
    key = jax.random.PRNGKey(0)
    # Non-negative feature map (upstream CNN + ReLU) keeps the fractional power
    # well-defined, matching how this module is used.
    x = jnp.abs(jax.random.normal(key, (2, 4, 16, 16), dtype=jnp.float32))

    out = jax.block_until_ready(rgem(x, pr=2.5, size=5))

    ref = _rgem_ref(x, pr=2.5, size=5)
    assert out.shape == x.shape and out.dtype == x.dtype
    assert jnp.allclose(out, ref, atol=1e-4, rtol=1e-4), "mismatch vs reference"

    print("KERNEL_OK")
</pallas_src>

<mosaic_0001>
module attributes {stable_mosaic.version = 11 : i64} {
  func.func @_rgem_kernel(%arg0: i32, %arg1: i32, %arg2: memref<1x16x16x4xf32, #tpu.memory_space<vmem>>, %arg3: memref<1x16x16x4xf32, #tpu.memory_space<vmem>>) attributes {dimension_semantics = [#tpu.dimension_semantics<parallel>, #tpu.dimension_semantics<parallel>], iteration_bounds = array<i64: 2, 1>, scalar_prefetch = 0 : i64, scratch_operands = 0 : i64, tpu.core_type = #tpu.core_type<tc>, window_params = [{transform_indices = @transform_0, window_bounds = array<i64: 1, 16, 16, 4>}, {transform_indices = @transform_1, window_bounds = array<i64: 1, 16, 16, 4>}]} {
    %c0 = arith.constant 0 : index
    %c0_0 = arith.constant 0 : index
    %c0_1 = arith.constant 0 : index
    %c0_2 = arith.constant 0 : index
    %0 = vector.load %arg2[%c0, %c0_0, %c0_1, %c0_2] : memref<1x16x16x4xf32, #tpu.memory_space<vmem>>, vector<1x16x16x4xf32>
    %1 = vector.shape_cast %0 : vector<1x16x16x4xf32> to vector<16x16x4xf32>
    %2 = arith.mulf %1, %1 : vector<16x16x4xf32>
    %3 = math.sqrt %1 : vector<16x16x4xf32>
    %4 = arith.mulf %2, %3 : vector<16x16x4xf32>
    %5 = vector.extract_strided_slice %4 {offsets = [2, 0, 0], sizes = [1, 16, 4], strides = [1, 1, 1]} : vector<16x16x4xf32> to vector<1x16x4xf32>
    %6 = vector.extract_strided_slice %4 {offsets = [1, 0, 0], sizes = [1, 16, 4], strides = [1, 1, 1]} : vector<16x16x4xf32> to vector<1x16x4xf32>
    %7 = vector.extract_strided_slice %4 {offsets = [14, 0, 0], sizes = [1, 16, 4], strides = [1, 1, 1]} : vector<16x16x4xf32> to vector<1x16x4xf32>
    %8 = vector.extract_strided_slice %4 {offsets = [13, 0, 0], sizes = [1, 16, 4], strides = [1, 1, 1]} : vector<16x16x4xf32> to vector<1x16x4xf32>
    %9 = tpu.concatenate %5, %6, %4, %7, %8 in 0 : vector<1x16x4xf32>, vector<1x16x4xf32>, vector<16x16x4xf32>, vector<1x16x4xf32>, vector<1x16x4xf32> -> vector<20x16x4xf32>
    %10 = vector.extract_strided_slice %9 {offsets = [0, 0, 0], sizes = [16, 16, 4], strides = [1, 1, 1]} : vector<20x16x4xf32> to vector<16x16x4xf32>
    %11 = vector.extract_strided_slice %9 {offsets = [1, 0, 0], sizes = [16, 16, 4], strides = [1, 1, 1]} : vector<20x16x4xf32> to vector<16x16x4xf32>
    %12 = arith.addf %10, %11 : vector<16x16x4xf32>
    %13 = vector.extract_strided_slice %9 {offsets = [2, 0, 0], sizes = [16, 16, 4], strides = [1, 1, 1]} : vector<20x16x4xf32> to vector<16x16x4xf32>
    %14 = arith.addf %12, %13 : vector<16x16x4xf32>
    %15 = vector.extract_strided_slice %9 {offsets = [3, 0, 0], sizes = [16, 16, 4], strides = [1, 1, 1]} : vector<20x16x4xf32> to vector<16x16x4xf32>
    %16 = arith.addf %14, %15 : vector<16x16x4xf32>
    %17 = vector.extract_strided_slice %9 {offsets = [4, 0, 0], sizes = [16, 16, 4], strides = [1, 1, 1]} : vector<20x16x4xf32> to vector<16x16x4xf32>
    %18 = arith.addf %16, %17 : vector<16x16x4xf32>
    %19 = vector.extract_strided_slice %18 {offsets = [0, 2, 0], sizes = [16, 1, 4], strides = [1, 1, 1]} : vector<16x16x4xf32> to vector<16x1x4xf32>
    %20 = vector.extract_strided_slice %18 {offsets = [0, 1, 0], sizes = [16, 1, 4], strides = [1, 1, 1]} : vector<16x16x4xf32> to vector<16x1x4xf32>
    %21 = vector.extract_strided_slice %18 {offsets = [0, 14, 0], sizes = [16, 1, 4], strides = [1, 1, 1]} : vector<16x16x4xf32> to vector<16x1x4xf32>
    %22 = vector.extract_strided_slice %18 {offsets = [0, 13, 0], sizes = [16, 1, 4], strides = [1, 1, 1]} : vector<16x16x4xf32> to vector<16x1x4xf32>
    %23 = tpu.concatenate %19, %20, %18, %21, %22 in 1 : vector<16x1x4xf32>, vector<16x1x4xf32>, vector<16x16x4xf32>, vector<16x1x4xf32>, vector<16x1x4xf32> -> vector<16x20x4xf32>
    %24 = vector.extract_strided_slice %23 {offsets = [0, 0, 0], sizes = [16, 16, 4], strides = [1, 1, 1]} : vector<16x20x4xf32> to vector<16x16x4xf32>
    %25 = vector.extract_strided_slice %23 {offsets = [0, 1, 0], sizes = [16, 16, 4], strides = [1, 1, 1]} : vector<16x20x4xf32> to vector<16x16x4xf32>
    %26 = arith.addf %24, %25 : vector<16x16x4xf32>
    %27 = vector.extract_strided_slice %23 {offsets = [0, 2, 0], sizes = [16, 16, 4], strides = [1, 1, 1]} : vector<16x20x4xf32> to vector<16x16x4xf32>
    %28 = arith.addf %26, %27 : vector<16x16x4xf32>
    %29 = vector.extract_strided_slice %23 {offsets = [0, 3, 0], sizes = [16, 16, 4], strides = [1, 1, 1]} : vector<16x20x4xf32> to vector<16x16x4xf32>
    %30 = arith.addf %28, %29 : vector<16x16x4xf32>
    %31 = vector.extract_strided_slice %23 {offsets = [0, 4, 0], sizes = [16, 16, 4], strides = [1, 1, 1]} : vector<16x20x4xf32> to vector<16x16x4xf32>
    %32 = arith.addf %30, %31 : vector<16x16x4xf32>
    %cst = arith.constant 4.000000e-02 : f32
    %33 = vector.broadcast %cst : f32 to vector<16x16x4xf32>
    %34 = arith.mulf %32, %33 : vector<16x16x4xf32>
    %cst_3 = arith.constant 4.000000e-01 : f32
    %35 = vector.broadcast %cst_3 : f32 to vector<16x16x4xf32>
    %36 = math.powf %34, %35 : vector<16x16x4xf32>
    %37 = arith.addf %36, %1 : vector<16x16x4xf32>
    %cst_4 = arith.constant 5.000000e-01 : f32
    %38 = vector.broadcast %cst_4 : f32 to vector<16x16x4xf32>
    %39 = arith.mulf %38, %37 : vector<16x16x4xf32>
    %c0_5 = arith.constant 0 : index
    %c0_6 = arith.constant 0 : index
    %c0_7 = arith.constant 0 : index
    %c0_8 = arith.constant 0 : index
    %40 = vector.load %arg3[%c0_5, %c0_6, %c0_7, %c0_8] : memref<1x16x16x4xf32, #tpu.memory_space<vmem>>, vector<1x16x16x4xf32>
    %41 = vector.shape_cast %40 : vector<1x16x16x4xf32> to vector<16x16x4xf32>
    %42 = vector.shape_cast %39 : vector<16x16x4xf32> to vector<1x16x16x4xf32>
    tpu.vector_store %arg3[%c0_5, %c0_6, %c0_7, %c0_8], %42 {strides = array<i32>} : memref<1x16x16x4xf32, #tpu.memory_space<vmem>>, vector<1x16x16x4xf32>,
    return
  }
  func.func @transform_0(%arg0: i32, %arg1: i32) -> (i32, i32, i32, i32) {
    %c0_i32 = arith.constant 0 : i32
    %c0_i32_0 = arith.constant 0 : i32
    %c0_i32_1 = arith.constant 0 : i32
    return %arg0, %c0_i32, %c0_i32_0, %arg1 : i32, i32, i32, i32
  }
  func.func @transform_1(%arg0: i32, %arg1: i32) -> (i32, i32, i32, i32) {
    %c0_i32 = arith.constant 0 : i32
    %c0_i32_0 = arith.constant 0 : i32
    %c0_i32_1 = arith.constant 0 : i32
    return %arg0, %c0_i32, %c0_i32_0, %arg1 : i32, i32, i32, i32
  }
}

</mosaic_0001>

<bundles_post_ra>
// kernel: tpu_custom_call.1
= control target key start
LH: loop header
LB: loop body
LE: loop exit
PB: predicated region body
PF: predicated region fallthrough
CT: control target
= control target key end

     0   :  { %s2855_s6 = smov 0   ;;  %s2857_s7 = smov 0   ;;  %s4848_s0 = inlined_call_operand.vmem [shape: f32[2,16,16,4], index: 0, kind: input, shape index: {}]   ;;  %s4849_s1 = inlined_call_operand.vmem [shape: f32[2,16,16,4], index: 1, kind: output, shape index: {}]  }
   0x1   :  { %s2859_s8 = smov 0  }
   0x2 LB: > { %s23_s9 = sadd.s32 1, %s2839_s7  ;;  %p1743_p0 = scmp.ge.s32.totalorder %s2843_s8, 1  ;;  %s2843_s8 = sphi %s2859_s8, %s11_s8   ;;  %s2839_s7 = sphi %s2857_s7, %s5032_s7   ;;  %s2835_s6 = sphi %s2855_s6, %s5031_s6  }
   0x3   : > { %p25_p1 = scmp.ge.s32.totalorder %s23_s9, 2  ;;  %p106_p2 = scmp.lt.s32.totalorder %s2843_s8, 3 }
   0x5   : > { %s5034_s9 = smov (%p25_p1, %s23_s9), 0  ;;  %p107_p3 = pnand %p1743_p0, %p106_p2 }
   0x6   : > { %p132_p4 = scmp.lt.s32.totalorder (!%p107_p3), %s2835_s6, 1 }
   0x7   : > { %110 = sbr.rel (%p107_p3) target bundleno = 461 (0x1cd), region = 24 }
   0xc   : > { %s5036_s6 = smov (!%p132_p4, %s2835_s6), 1 }
   0xd   : > { %s1750_s10 = sshll.u32 %s5036_s6, 8 }
   0xe   : > { %s2881_s13 = scalar_lea.vmem %s4848_s0, %s1750_s10  ;;  %s3343_s16 = scalar_lea.vmem %s4849_s1, %s1750_s10 }
   0xf   : > { %v2884_v0 = vld [vmem:[%s2881_s13] sm:$0xff]  ;;  %v2887_v1 = vld [vmem:[%s2881_s13 + $0x8] sm:$0xff]  ;;  %v2890_v2 = vld [vmem:[%s2881_s13 + $0x10] sm:$0xff] }
  0x10   : > { %2608 = vrsqrt.f32 %v2884_v0  ;;  %v2894_v3 = vld [vmem:[%s2881_s13 + $0x18] sm:$0xff]  ;;  %v2897_v4 = vld [vmem:[%s2881_s13 + $0x20] sm:$0xff]  ;;  %v2901_v5 = vld [vmem:[%s2881_s13 + $0x28] sm:$0xff]  ;;  %v180_v8 = vmul.f32 %v2884_v0, %v2884_v0  ;;  %v181_v9 = vmul.f32 %v2887_v1, %v2887_v1  ;;  %v182_v10 = vmul.f32 %v2890_v2, %v2890_v2 }
  0x11   : > { %2610 = vrsqrt.f32 %v2887_v1  ;;  %v2907_v6 = vld [vmem:[%s2881_s13 + $0x30] sm:$0xff]  ;;  %v2911_v7 = vld [vmem:[%s2881_s13 + $0x38] sm:$0xff]  ;;  %v2922_v11 = vld [vmem:[%s2881_s13 + $0x40] sm:$0xff]  ;;  %v183_v12 = vmul.f32 %v2894_v3, %v2894_v3  ;;  %v2928_v13 = vmul.f32 %v2897_v4, %v2897_v4  ;;  %v2932_v14 = vmul.f32 %v2901_v5, %v2901_v5 }
  0x12   : > { %2612 = vrsqrt.f32 %v2890_v2  ;;  %vm214_vm0 = vcmp.eq.f32.partialorder %v2884_v0, inf  ;;  %vm216_vm1 = vcmp.eq.f32.partialorder %v2884_v0, 0.0  ;;  %v217_v15 = vand.u32 2147483648, %v2884_v0  ;;  %v2948_v20 = vld [vmem:[%s2881_s13 + $0x48] sm:$0xff] }
  0x13   : > { %2614 = vrsqrt.f32 %v2894_v3  ;;  %vm221_vm2 = vcmp.eq.f32.partialorder %v2887_v1, inf  ;;  %vm223_vm3 = vcmp.eq.f32.partialorder %v2887_v1, 0.0  ;;  %v224_v16 = vand.u32 2147483648, %v2887_v1 }
  0x14   : > { %2616 = vrsqrt.f32 %v2897_v4  ;;  %vm228_vm4 = vcmp.eq.f32.partialorder %v2890_v2, inf  ;;  %vm230_vm5 = vcmp.eq.f32.partialorder %v2890_v2, 0.0  ;;  %v231_v18 = vand.u32 2147483648, %v2890_v2 }
  0x15   : > { %2618 = vrsqrt.f32 %v2901_v5  ;;  %vm235_vm6 = vcmp.eq.f32.partialorder %v2894_v3, inf  ;;  %vm237_vm7 = vcmp.eq.f32.partialorder %v2894_v3, 0.0  ;;  %v238_v19 = vand.u32 2147483648, %v2894_v3 }
  0x16   : > { %2620 = vrsqrt.f32 %v2907_v6  ;;  %vm242_vm8 = vcmp.eq.f32.partialorder %v2897_v4, inf  ;;  %vm244_vm9 = vcmp.eq.f32.partialorder %v2897_v4, 0.0  ;;  %v245_v22 = vand.u32 2147483648, %v2897_v4 }
  0x17   : > { %2622 = vrsqrt.f32 %v2911_v7  ;;  %vm249_vm10 = vcmp.eq.f32.partialorder %v2901_v5, inf  ;;  %vm251_vm11 = vcmp.eq.f32.partialorder %v2901_v5, 0.0  ;;  %v252_v24 = vand.u32 2147483648, %v2901_v5 }
  0x18   : > { %2624 = vrsqrt.f32 %v2922_v11  ;;  %v186_v25 = vmul.f32 %v2907_v6, %v2907_v6  ;;  %vm256_vm12 = vcmp.eq.f32.partialorder %v2907_v6, inf  ;;  %vm258_vm13 = vcmp.eq.f32.partialorder %v2907_v6, 0.0 }
  0x19   : > { %2626 = vrsqrt.f32 %v2948_v20  ;;  %v259_v32 = vand.u32 2147483648, %v2907_v6  ;;  %vm263_vm14 = vcmp.eq.f32.partialorder %v2911_v7, inf  ;;  %vm265_vm15 = vcmp.eq.f32.partialorder %v2911_v7, 0.0 }
  0x1a   : > { %v266_v49 = vand.u32 2147483648, %v2911_v7  ;;  %v187_v60 = vmul.f32 %v2911_v7, %v2911_v7 }
  0x1d   : > { %v2609_v17 = vpop.eup %2608 }
  0x1e   : > { %v213_v21 = vmul.f32 %v2609_v17, %v2884_v0  ;;  %v2611_v23 = vpop.eup %2610 }
  0x1f   : > { %v2613_v26 = vpop.eup %2612  ;;  %v220_v28 = vmul.f32 %v2611_v23, %v2887_v1 }
  0x20   : > { %v215_v27 = vsel %vm214_vm0, %v2884_v0, %v213_v21  ;;  %v2615_v29 = vpop.eup %2614  ;;  %v227_v31 = vmul.f32 %v2613_v26, %v2890_v2  ;;  %vm4854_vm0 = vcmask 1040384   ;;  %v3046_v21 = vld [vmem:[%s2881_s13 + $0x50] sm:$0xff] }
  0x21   : > { %v218_v30 = vsel %vm216_vm1, %v217_v15, %v215_v27  ;;  %v2617_v33 = vpop.eup %2616  ;;  %v222_v34 = vsel %vm221_vm2, %v2887_v1, %v220_v28  ;;  %v234_v35 = vmul.f32 %v2615_v29, %v2894_v3  ;;  %vm4855_vm1 = vcmask 1041408  }
  0x22   : > { %v2619_v36 = vpop.eup %2618  ;;  %v225_v37 = vsel %vm223_vm3, %v224_v16, %v222_v34  ;;  %v229_v38 = vsel %vm228_vm4, %v2890_v2, %v227_v31  ;;  %v241_v39 = vmul.f32 %v2617_v33, %v2897_v4  ;;  %v436_v40 = vmul.f32 %v218_v30, %v180_v8 }
  0x23   : > { %v232_v41 = vsel %vm230_vm5, %v231_v18, %v229_v38  ;;  %v236_v42 = vsel %vm235_vm6, %v2894_v3, %v234_v35  ;;  %v248_v43 = vmul.f32 %v2619_v36, %v2901_v5  ;;  %v437_v44 = vmul.f32 %v225_v37, %v181_v9  ;;  %v2621_v45 = vpop.eup %2620 }
  0x24   : > { %v239_v46 = vsel %vm237_vm7, %v238_v19, %v236_v42  ;;  %v243_v47 = vsel %vm242_vm8, %v2897_v4, %v241_v39  ;;  %v438_v48 = vmul.f32 %v232_v41, %v182_v10  ;;  %v2623_v50 = vpop.eup %2622  ;;  %v255_v54 = vmul.f32 %v2621_v45, %v2907_v6 }
  0x25   : > { %v246_v51 = vsel %vm244_vm9, %v245_v22, %v243_v47  ;;  %v250_v52 = vsel %vm249_vm10, %v2901_v5, %v248_v43  ;;  %v439_v53 = vmul.f32 %v239_v46, %v183_v12  ;;  %v262_v58 = vmul.f32 %v2623_v50, %v2911_v7  ;;  %v2625_v63 = vpop.eup %2624 }
  0x26   : > { %v253_v55 = vsel %vm251_vm11, %v252_v24, %v250_v52  ;;  %v3003_v56 = vmul.f32 %v246_v51, %v2928_v13  ;;  %v3005_v57 = vadd.f32 %v438_v48, %v436_v40  ;;  %v257_v61 = vsel %vm256_vm12, %v2907_v6, %v255_v54  ;;  %v2627_v26 = vpop.eup %2626 }
  0x27   : > { %v3009_v59 = vmul.f32 %v253_v55, %v2932_v14  ;;  %v3016_v62 = vadd.f32 %v439_v53, %v437_v44  ;;  %v260_v9 = vsel %vm258_vm13, %v259_v32, %v257_v61  ;;  %v264_v10 = vsel %vm263_vm14, %v2911_v7, %v262_v58 }
  0x28   : > { %v3019_v8 = vadd.f32 %v3003_v56, %v438_v48  ;;  %v498_v12 = vadd.f32 %v3005_v57, %v438_v48  ;;  %v267_v14 = vsel %vm265_vm15, %v266_v49, %v264_v10  ;;  %v3035_v16 = vmul.f32 %v2922_v11, %v2922_v11 }
  0x29   : > { %v3028_v13 = vadd.f32 %v3009_v59, %v439_v53  ;;  %v499_v15 = vadd.f32 %v3016_v62, %v439_v53  ;;  %v3038_v17 = vmul.f32 %v260_v9, %v186_v25  ;;  %v3043_v19 = vmul.f32 %v2948_v20, %v2948_v20  ;;  %v3054_v25 = vld [vmem:[%s2881_s13 + $0x58] sm:$0xff] }
  0x2a   : > { %v496_v6 = vadd.f32 %v3019_v8, %v436_v40  ;;  %v530_v18 = vadd.f32 %v498_v12, %v3003_v56  ;;  %vm915_vm2 = vcmask 1046528   ;;  %vm4853_vm3 = vcmask 1045504  }
  0x2b   : > { %v497_v7 = vadd.f32 %v3028_v13, %v437_v44  ;;  %vm4851_vm4 = vcmask 1042432   ;;  %v3049_v22 = vmul.f32 %v267_v14, %v187_v60  ;;  %v531_v23 = vadd.f32 %v499_v15, %v3009_v59 }
  0x2c   : > { %v269_v24 = vmul.f32 %v2625_v63, %v2922_v11  ;;  %v528_v27 = vadd.f32 %v496_v6, %v438_v48  ;;  %vm4852_vm5 = vcmask 1044480   ;;  %v562_v28 = vadd.f32 %v530_v18, %v3038_v17 }
  0x2d   : > { %vm270_vm6 = vcmp.eq.f32.partialorder %v2922_v11, inf  ;;  %v273_v29 = vand.u32 2147483648, %v2922_v11  ;;  %v529_v30 = vadd.f32 %v497_v7, %v439_v53  ;;  %v3060_v31 = vadd.f32 %v531_v23, %v3049_v22 }
  0x2e   : > { %v280_v32 = vand.u32 2147483648, %v2948_v20  ;;  %2628 = vrsqrt.f32 %v3046_v21  ;;  %v560_v33 = vadd.f32 %v528_v27, %v3003_v56  ;;  %v609_v34 = vrot.slane %v562_v28, 2 }
  0x2f   : > { %v660_v35 = vrot.slane %v562_v28, 6  ;;  %2630 = vrsqrt.f32 %v3054_v25  ;;  %v561_v36 = vadd.f32 %v529_v30, %v3009_v59  ;;  %vm4850_vm7 = vcmask 1043456  }
  0x30   : > { %v661_v37 = vrot.slane %v3060_v31, 6  ;;  %v3069_v38 = vsel %vm270_vm6, %v2922_v11, %v269_v24  ;;  %v3072_v39 = vmul.f32 %v2627_v26, %v2948_v20  ;;  %v608_v40 = vrot.slane %v560_v33, 2 }
  0x31   : > { %v657_v41 = vrot.slane %v560_v33, 6  ;;  %v819_v42 = vsel %vm4854_vm0, %v609_v34, %v562_v28  ;;  %v754_v43 = vrot.slane %v3060_v31, 4  ;;  %v658_v44 = vrot.slane %v561_v36, 6 }
  0x32   : > { %v753_v45 = vrot.slane %v561_v36, 4  ;;  %v3077_v46 = vsel %vm4855_vm1, %v660_v35, %v661_v37  ;;  %v786_v47 = vrot.slane %v3060_v31, 2  ;;  %v818_v48 = vsel %vm4854_vm0, %v608_v40, %v560_v33 }
  0x33   : > { %v785_v49 = vrot.slane %v561_v36, 2  ;;  %v835_v50 = vsel %vm4855_vm1, %v819_v42, %v660_v35  ;;  %v922_v51 = vrot.slane %v3077_v46, 1  ;;  %v659_v52 = vsel %vm4855_vm1, %v657_v41, %v658_v44 }
  0x34   : > { %v834_v53 = vsel %vm4855_vm1, %v818_v48, %v657_v41  ;;  %v850_v54 = vsel %vm4855_vm1, %v658_v44, %v753_v45  ;;  %v921_v55 = vrot.slane %v835_v50, 1  ;;  %v917_v60 = vrot.slane %v659_v52, 1 }
  0x35   : > { %v916_v58 = vrot.slane %v834_v53, 1  ;;  %v1061_v61 = vrot.slane %v834_v53, 2  ;;  %v1062_v63 = vrot.slane %v659_v52, 2  ;;  %vm277_vm8 = vcmp.eq.f32.partialorder %v2948_v20, inf }
  0x36   : > { %v1206_v9 = vrot.slane %v834_v53, 3  ;;  %v1207_v10 = vrot.slane %v659_v52, 3  ;;  %v1351_v12 = vrot.slane %v834_v53, 4  ;;  %v1352_v14 = vrot.slane %v659_v52, 4 }
  0x37   : > { %v918_v15 = vsel %vm915_vm2, %v916_v58, %v917_v60  ;;  %v1063_v6 = vsel %vm4853_vm3, %v1061_v61, %v1062_v63  ;;  %v867_v18 = vsel %vm4851_vm4, %v850_v54, %v785_v49  ;;  %v923_v7 = vsel %vm915_vm2, %v921_v55, %v922_v51 }
  0x38   : > { %v1028_v23 = vadd.f32 %v918_v15, %v834_v53  ;;  %v1208_v24 = vsel %vm4852_vm5, %v1206_v9, %v1207_v10  ;;  %v919_v26 = vrot.slane %v867_v18, 1  ;;  %v1067_v27 = vrot.slane %v3077_v46, 2 }
  0x39   : > { %vm272_vm9 = vcmp.eq.f32.partialorder %v2922_v11, 0.0  ;;  %v1064_v28 = vrot.slane %v867_v18, 2  ;;  %v1209_v30 = vrot.slane %v867_v18, 3  ;;  %v1354_v31 = vrot.slane %v867_v18, 4 }
  0x3a   : > { %v1030_v33 = vadd.f32 %v923_v7, %v835_v50  ;;  %vm279_vm10 = vcmp.eq.f32.partialorder %v2948_v20, 0.0  ;;  %v1173_v34 = vadd.f32 %v1063_v6, %v1028_v23  ;;  %v920_v35 = vsel %vm915_vm2, %v917_v60, %v919_v26 }
  0x3b   : > { %v1066_v36 = vrot.slane %v835_v50, 2  ;;  %v1211_v40 = vrot.slane %v835_v50, 3  ;;  %v2629_v41 = vpop.eup %2628  ;;  %v1353_v42 = vsel %vm4850_vm7, %v1351_v12, %v1352_v14  ;;  %v1029_v44 = vadd.f32 %v920_v35, %v659_v52 }
  0x3c   : > { %v1065_v45 = vsel %vm4853_vm3, %v1062_v63, %v1064_v28  ;;  %v1210_v48 = vsel %vm4852_vm5, %v1207_v10, %v1209_v30  ;;  %v3099_v49 = vpop.eup %2630  ;;  %v1318_v53 = vadd.f32 %v1208_v24, %v1173_v34  ;;  %v1212_v55 = vrot.slane %v3077_v46, 3 }
  0x3d   : > { %v1068_v54 = vsel %vm4853_vm3, %v1066_v36, %v1067_v27  ;;  %v1356_v58 = vrot.slane %v835_v50, 4  ;;  %v1174_v61 = vadd.f32 %v1065_v45, %v1029_v44  ;;  %v1357_v9 = vrot.slane %v3077_v46, 4 }
  0x3e   : > { %v1175_v60 = vadd.f32 %v1068_v54, %v1030_v33  ;;  %v851_v15 = vsel %vm4855_vm1, %v661_v37, %v754_v43  ;;  %v1463_v12 = vadd.f32 %v1353_v42, %v1318_v53  ;;  %v1355_v52 = vsel %vm4850_vm7, %v1352_v14, %v1354_v31 }
  0x3f   : > { %v1213_v63 = vsel %vm4852_vm5, %v1211_v40, %v1212_v55  ;;  %v868_v10 = vsel %vm4851_vm4, %v851_v15, %v786_v47  ;;  %v1319_v6 = vadd.f32 %v1210_v48, %v1174_v61  ;;  %v1358_v7 = vsel %vm4850_vm7, %v1356_v58, %v1357_v9 }
  0x40   : > { %v1320_v18 = vadd.f32 %v1213_v63, %v1175_v60  ;;  %v924_v23 = vrot.slane %v868_v10, 1  ;;  %v3109_v24 = vmul.f32 0.04, %v1463_v12  ;;  %v278_v50 = vsel %vm277_vm8, %v2948_v20, %v3072_v39 }
  0x41   : > { %v500_v37 = vadd.f32 %v3005_v57, %v3003_v56  ;;  %v501_v43 = vadd.f32 %v3016_v62, %v3009_v59  ;;  %v1464_v14 = vadd.f32 %v1355_v52, %v1319_v6  ;;  %v1069_v28 = vrot.slane %v868_v10, 2 }
  0x42   : > { %v1465_v47 = vadd.f32 %v1358_v7, %v1320_v18  ;;  %v925_v26 = vsel %vm915_vm2, %v922_v51, %v924_v23  ;;  %v1756_v30 = vand.u32 2147483647, %v3109_v24  ;;  %v3123_v31 = vmul.f32 %v3046_v21, %v3046_v21 }
  0x43   : > { %v3127_v39 = vmul.f32 %v3054_v25, %v3054_v25  ;;  %vm284_vm11 = vcmp.eq.f32.partialorder %v3046_v21, inf  ;;  %v3130_v57 = vmul.f32 0.04, %v1464_v14  ;;  %v1214_v33 = vrot.slane %v868_v10, 3 }
  0x44   : > { %v3132_v62 = vmul.f32 0.04, %v1465_v47  ;;  %v274_v51 = vsel %vm272_vm9, %v273_v29, %v3069_v38  ;;  %2632 = vlog2.f32 %v1756_v30  ;;  %v1031_v34 = vadd.f32 %v925_v26, %v3077_v46 }
  0x45   : > { %v281_v35 = vsel %vm279_vm10, %v280_v32, %v278_v50  ;;  %v532_v36 = vadd.f32 %v500_v37, %v3038_v17  ;;  %v1782_v40 = vand.u32 2147483647, %v3130_v57  ;;  %v1070_v42 = vsel %vm4853_vm3, %v1067_v27, %v1069_v28  ;;  %v3164_v27 = vld [vmem:[%s2881_s13 + $0x60] sm:$0xff] }
  0x46   : > { %v1359_v44 = vrot.slane %v868_v10, 4  ;;  %v533_v11 = vadd.f32 %v501_v43, %v3049_v22  ;;  %v1808_v29 = vand.u32 2147483647, %v3132_v62  ;;  %vm286_vm12 = vcmp.eq.f32.partialorder %v3046_v21, 0.0 }
  0x47   : > { %v287_v38 = vand.u32 2147483648, %v3046_v21  ;;  %vm291_vm13 = vcmp.eq.f32.partialorder %v3054_v25, inf  ;;  %2634 = vlog2.f32 %v1782_v40  ;;  %v1215_v20 = vsel %vm4852_vm5, %v1212_v55, %v1214_v33 }
  0x48   : > { %v3158_v32 = vmul.f32 %v274_v51, %v3035_v16  ;;  %v3161_v46 = vmul.f32 %v281_v35, %v3043_v19  ;;  %2636 = vlog2.f32 %v1808_v29  ;;  %v1176_v45 = vadd.f32 %v1070_v42, %v1031_v34  ;;  %v3175_v19 = vld [vmem:[%s2881_s13 + $0x68] sm:$0xff] }
  0x49   : > { %vm293_vm14 = vcmp.eq.f32.partialorder %v3054_v25, 0.0  ;;  %v294_v48 = vand.u32 2147483648, %v3054_v25  ;;  %v1360_v53 = vsel %vm4850_vm7, %v1357_v9, %v1359_v44  ;;  %v283_v55 = vmul.f32 %v2629_v41, %v3046_v21 }
  0x4a   : > { %v564_v54 = vadd.f32 %v532_v36, %v3158_v32  ;;  %v565_v16 = vadd.f32 %v533_v11, %v3161_v46  ;;  %v1321_v58 = vadd.f32 %v1215_v20, %v1176_v45  ;;  %v3179_v61 = vmul.f32 %v3164_v27, %v3164_v27 }
  0x4b   : > { %v3183_v60 = vmul.f32 %v3175_v19, %v3175_v19  ;;  %2638 = vrsqrt.f32 %v3164_v27  ;;  %v301_v52 = vand.u32 2147483648, %v3164_v27  ;;  %v290_v10 = vmul.f32 %v3099_v49, %v3054_v25 }
  0x4c   : > { %v610_v9 = vrot.slane %v564_v54, 2  ;;  %v663_v15 = vrot.slane %v564_v54, 6  ;;  %v664_v12 = vrot.slane %v565_v16, 6  ;;  %v1466_v63 = vadd.f32 %v1360_v53, %v1321_v58 }
  0x4d   : > { %v755_v41 = vrot.slane %v565_v16, 4  ;;  %2640 = vrsqrt.f32 %v3175_v19  ;;  %v787_v7 = vrot.slane %v565_v16, 2  ;;  %v285_v23 = vsel %vm284_vm11, %v3046_v21, %v283_v55 }
  0x4e   : > { %v3191_v6 = vsel %vm4855_vm1, %v663_v15, %v664_v12  ;;  %v820_v18 = vsel %vm4854_vm0, %v610_v9, %v564_v54  ;;  %v3197_v50 = vmul.f32 0.04, %v1466_v63  ;;  %v292_v34 = vsel %vm291_vm13, %v3054_v25, %v290_v10 }
  0x4f   : > { %v836_v37 = vsel %vm4855_vm1, %v820_v18, %v663_v15  ;;  %v927_v43 = vrot.slane %v3191_v6, 1  ;;  %v1072_v49 = vrot.slane %v3191_v6, 2  ;;  %v1217_v28 = vrot.slane %v3191_v6, 3 }
  0x50   : > { %v926_v14 = vrot.slane %v836_v37, 1  ;;  %v1071_v47 = vrot.slane %v836_v37, 2  ;;  %v1216_v26 = vrot.slane %v836_v37, 3  ;;  %v1834_v33 = vand.u32 2147483647, %v3197_v50 }
  0x51   : > { %v852_v51 = vsel %vm4855_vm1, %v664_v12, %v755_v41  ;;  %v502_v35 = vadd.f32 %v3019_v8, %v3038_v17  ;;  %v2633_v36 = vpop.eup %2632  ;;  %v288_v11 = vsel %vm286_vm12, %v287_v38, %v285_v23  ;;  %v503_v20 = vadd.f32 %v3028_v13, %v3049_v22 }
  0x52   : > { %v928_v42 = vsel %vm915_vm2, %v926_v14, %v927_v43  ;;  %v1073_v44 = vsel %vm4853_vm3, %v1071_v47, %v1072_v49  ;;  %v1758_v45 = vmul.f32 0.4, %v2633_v36  ;;  %2642 = vlog2.f32 %v1834_v33 }
  0x53   : > { %v1032_v53 = vadd.f32 %v928_v42, %v836_v37  ;;  %v1218_v54 = vsel %vm4852_vm5, %v1216_v26, %v1217_v28  ;;  %v1361_v16 = vrot.slane %v836_v37, 4  ;;  %v1362_v8 = vrot.slane %v3191_v6, 4 }
  0x54   : > { %v869_v55 = vsel %vm4851_vm4, %v852_v51, %v787_v7  ;;  %v295_v58 = vsel %vm293_vm14, %v294_v48, %v292_v34  ;;  %v2635_v21 = vpop.eup %2634  ;;  %2644 = vpow2.f32 %v1758_v45  ;;  %vm298_vm15 = vcmp.eq.f32.partialorder %v3164_v27, inf }
  0x55   : > { %v1177_v38 = vadd.f32 %v1073_v44, %v1032_v53  ;;  %v929_v9 = vrot.slane %v869_v55, 1  ;;  %v1074_v13 = vrot.slane %v869_v55, 2  ;;  %v2637_v15 = vpop.eup %2636  ;;  %v1784_v12 = vmul.f32 0.4, %v2635_v21 }
  0x56   : > { %v1363_v63 = vsel %vm4850_vm7, %v1361_v16, %v1362_v8  ;;  %v1219_v41 = vrot.slane %v869_v55, 3  ;;  %v1364_v10 = vrot.slane %v869_v55, 4  ;;  %v1810_v18 = vmul.f32 0.4, %v2637_v15 }
  0x57   : > { %v1322_v23 = vadd.f32 %v1218_v54, %v1177_v38  ;;  %v930_v37 = vsel %vm915_vm2, %v927_v43, %v929_v9  ;;  %v1075_v7 = vsel %vm4853_vm3, %v1072_v49, %v1074_v13  ;;  %vm1760_vm6 = vcmp.lt.f32.partialorder %v3109_v24, 0 }
  0x58   : > { %v2639_v25 = vpop.eup %2638  ;;  %2646 = vpow2.f32 %v1784_v12  ;;  %v1033_v48 = vadd.f32 %v930_v37, %v3191_v6  ;;  %v308_v14 = vand.u32 2147483648, %v3175_v19  ;;  %v1220_v26 = vsel %vm4852_vm5, %v1217_v28, %v1219_v41 }
  0x59   : > { %2648 = vpow2.f32 %v1810_v18  ;;  %v1467_v47 = vadd.f32 %v1363_v63, %v1322_v23  ;;  %v3232_v51 = vmul.f32 %v288_v11, %v3123_v31  ;;  %v3235_v49 = vmul.f32 %v295_v58, %v3127_v39 }
  0x5a   : > { %v2641_v43 = vpop.eup %2640  ;;  %v1178_v34 = vadd.f32 %v1075_v7, %v1033_v48  ;;  %v534_v36 = vadd.f32 %v502_v35, %v3158_v32  ;;  %v535_v42 = vadd.f32 %v503_v20, %v3161_v46  ;;  %vm1761_vm8 = vcmp.eq.f32.partialorder %v3109_v24, 0 }
  0x5b   : > { %vm1773_vm9 = vcmp.ne.f32.partialorder %v3109_v24, %v3109_v24  ;;  %v3242_v6 = vmul.f32 0.04, %v1467_v47  ;;  %v1365_v28 = vsel %vm4850_vm7, %v1362_v8, %v1364_v10  ;;  %vm1762_vm10 = vcmp.eq.f32.partialorder %v3109_v24, 1065353216 }
  0x5c   : > { %vm3248_vm11 = vcmp.eq.f32.partialorder %v1756_v30, 2139095040  ;;  %v1323_v39 = vadd.f32 %v1220_v26, %v1178_v34  ;;  %v566_v35 = vadd.f32 %v534_v36, %v3232_v51  ;;  %v3254_v44 = vadd.f32 %v535_v42, %v3235_v49 }
  0x5d   : > { %vm1786_vm12 = vcmp.lt.f32.partialorder %v3130_v57, 0  ;;  %vm1787_vm13 = vcmp.eq.f32.partialorder %v3130_v57, 0  ;;  %v1860_v11 = vand.u32 2147483647, %v3242_v6  ;;  %v297_v53 = vmul.f32 %v2639_v25, %v3164_v27 }
  0x5e   : > { %v1468_v30 = vadd.f32 %v1365_v28, %v1323_v39  ;;  %v611_v20 = vrot.slane %v566_v35, 2  ;;  %v666_v45 = vrot.slane %v566_v35, 6  ;;  %vm3266_vm5 = vcmp.eq.f32.partialorder %v1782_v40, 2139095040 }
  0x5f   : > { %2650 = vlog2.f32 %v1860_v11  ;;  %v667_v16 = vrot.slane %v3254_v44, 6  ;;  %v2643_v8 = vpop.eup %2642  ;;  %vm1825_vm14 = vcmp.ne.f32.partialorder %v3132_v62, %v3132_v62  ;;  %v756_v58 = vrot.slane %v3254_v44, 4 }
  0x60   : > { %v3277_v55 = vmul.f32 0.04, %v1468_v30  ;;  %v821_v40 = vsel %vm4854_vm0, %v611_v20, %v566_v35  ;;  %vm1623_vm4 = vcmask 31744   ;;  %vm3283_vm3 = vcmp.eq.f32.partialorder %v1808_v29, 2139095040 }
  0x61   : > { %v1836_v38 = vmul.f32 0.4, %v2643_v8  ;;  %v3288_v9 = vsel %vm4855_vm1, %v666_v45, %v667_v16  ;;  %v837_v13 = vsel %vm4855_vm1, %v821_v40, %v666_v45  ;;  %vm305_vm7 = vcmp.eq.f32.partialorder %v3175_v19, inf  ;;  %v2645_v15 = vpop.eup %2644 }
  0x62   : > { %v1886_v12 = vand.u32 2147483647, %v3277_v55  ;;  %v3296_v63 = vsel %vm298_vm15, %v3164_v27, %v297_v53  ;;  %v304_v29 = vmul.f32 %v2641_v43, %v3175_v19  ;;  %v3301_v41 = vadd.f32 %v3038_v17, %v3003_v56 }
  0x63   : > { %v1766_v10 = vsel %vm1760_vm6, 2143289344, %v2645_v15  ;;  %2652 = vpow2.f32 %v1836_v38  ;;  %v931_v18 = vrot.slane %v837_v13, 1  ;;  %v788_v23 = vrot.slane %v3254_v44, 2 }
  0x64   : > { %v1767_v37 = vsel %vm1761_vm8, 0, %v1766_v10  ;;  %2654 = vlog2.f32 %v1886_v12  ;;  %v932_v7 = vrot.slane %v3288_v9, 1  ;;  %v853_v25 = vsel %vm4855_vm1, %v667_v16, %v756_v58 }
  0x65   : > { %vm300_vm15 = vcmp.eq.f32.partialorder %v3164_v27, 0.0  ;;  %v2647_v56 = vpop.eup %2646  ;;  %v1772_v48 = vsel %vm3248_vm11, 2139095040, %v1767_v37  ;;  %v1076_v47 = vrot.slane %v837_v13, 2  ;;  %v1077_v26 = vrot.slane %v3288_v9, 2 }
  0x66   : > { %v1221_v43 = vrot.slane %v837_v13, 3  ;;  %vm307_vm6 = vcmp.eq.f32.partialorder %v3175_v19, 0.0  ;;  %v2649_v34 = vpop.eup %2648  ;;  %v1776_v36 = vsel %vm1773_vm9, 2143289344, %v1772_v48  ;;  %v1792_v42 = vsel %vm1786_vm12, 2143289344, %v2647_v56 }
  0x67   : > { %vm1838_vm8 = vcmp.lt.f32.partialorder %v3197_v50, 0  ;;  %v933_v28 = vsel %vm915_vm2, %v931_v18, %v932_v7  ;;  %v1222_v31 = vrot.slane %v3288_v9, 3  ;;  %v1777_v39 = vsel %vm1762_vm10, 1065353216, %v1776_v36 }
  0x68   : > { %v1793_v35 = vsel %vm1787_vm13, 0, %v1792_v42  ;;  %vm4862_vm11 = vcmp.lt.f32.partialorder %v3132_v62, 0  ;;  %vm1839_vm9 = vcmp.eq.f32.partialorder %v3197_v50, 0  ;;  %v1034_v30 = vadd.f32 %v933_v28, %v837_v13 }
  0x69   : > { %v1818_v44 = vsel %vm4862_vm11, 2143289344, %v2649_v34  ;;  %v1559_v20 = vadd.f32 %v1777_v39, %v2884_v0  ;;  %v1798_v45 = vsel %vm3266_vm5, 2139095040, %v1793_v35  ;;  %vm4863_vm12 = vcmp.eq.f32.partialorder %v3132_v62, 0 }
  0x6a   : > { %v1819_v53 = vsel %vm4863_vm12, 0, %v1818_v44  ;;  %vm4864_vm0 = vcmask 1045504   ;;  %vm4865_vm10 = vcmp.ne.f32.partialorder %v3130_v57, %v3130_v57  ;;  %vm1851_vm5 = vcmp.ne.f32.partialorder %v3197_v50, %v3197_v50 }
  0x6b   : > { %v1078_v24 = vsel %vm4864_vm0, %v1076_v47, %v1077_v26  ;;  %v1802_v16 = vsel %vm4865_vm10, 2143289344, %v1798_v45  ;;  %v1824_v0 = vsel %vm3283_vm3, 2139095040, %v1819_v53  ;;  %vm4866_vm13 = vcmask 1044480  }
  0x6c   : > { %v1179_v54 = vadd.f32 %v1078_v24, %v1034_v30  ;;  %v1223_v8 = vsel %vm4866_vm13, %v1221_v43, %v1222_v31  ;;  %v1591_v40 = vmul.f32 0.5, %v1559_v20  ;;  %vm4867_vm0 = vcmp.eq.f32.partialorder %v3130_v57, 1065353216  ;;  %v2651_v56 = vpop.eup %2650 }
  0x6d   : > { %v1803_v58 = vsel %vm4867_vm0, 1065353216, %v1802_v16  ;;  %v1828_v38 = vsel %vm1825_vm14, 2143289344, %v1824_v0  ;;  %v1366_v15 = vrot.slane %v837_v13, 4  ;;  %vm4868_vm11 = vcmp.eq.f32.partialorder %v3132_v62, 1065353216 }
  0x6e   : > { %v1560_v10 = vadd.f32 %v1803_v58, %v2887_v1  ;;  %v1829_v21 = vsel %vm4868_vm11, 1065353216, %v1828_v38  ;;  %v1324_v18 = vadd.f32 %v1223_v8, %v1179_v54  ;;  %v1367_v37 = vrot.slane %v3288_v9, 4  ;;  %1624 = vst.msk [vmem:[%s3343_s16] sm:$0xff] %vm1623_vm4, %v1591_v40  ;;  %v3423_v54 = vld [vmem:[%s2881_s13 + $0x70] sm:$0xff]  ;;  %v3431_v58 = vld [vmem:[%s2881_s13 + $0x78] sm:$0xff] }
  0x6f   : > { %v1561_v57 = vadd.f32 %v1829_v21, %v2890_v2  ;;  %vm4869_vm3 = vcmask 1042432   ;;  %v306_v13 = vsel %vm305_vm7, %v3175_v19, %v304_v29  ;;  %v473_v1 = vadd.f32 %v3049_v22, %v3009_v59 }
  0x70   : > { %v870_v48 = vsel %vm4869_vm3, %v853_v25, %v788_v23  ;;  %v1592_v62 = vmul.f32 0.5, %v1560_v10  ;;  %v1862_v47 = vmul.f32 0.4, %v2651_v56  ;;  %vm4870_vm14 = vcmask 1043456   ;;  %v2653_v28 = vpop.eup %2652 }
  0x71   : > { %v1368_v43 = vsel %vm4870_vm14, %v1366_v15, %v1367_v37  ;;  %v934_v34 = vrot.slane %v870_v48, 1  ;;  %v1593_v36 = vmul.f32 0.5, %v1561_v57  ;;  %vm3374_vm12 = vcmp.eq.f32.partialorder %v1834_v33, 2139095040  ;;  %v2655_v44 = vpop.eup %2654 }
  0x72   : > { %v1469_v23 = vadd.f32 %v1368_v43, %v1324_v18  ;;  %v1079_v25 = vrot.slane %v870_v48, 2  ;;  %1625 = vst.msk [vmem:[%s3343_s16 + $0x8] sm:$0xff] %vm1623_vm4, %v1592_v62  ;;  %2656 = vpow2.f32 %v1862_v47  ;;  %v1224_v59 = vrot.slane %v870_v48, 3 }
  0x73   : > { %v935_v29 = vsel %vm915_vm2, %v932_v7, %v934_v34  ;;  %v302_v42 = vsel %vm300_vm15, %v301_v52, %v3296_v63  ;;  %1626 = vst.msk [vmem:[%s3343_s16 + $0x10] sm:$0xff] %vm1623_vm4, %v1593_v36  ;;  %v1369_v35 = vrot.slane %v870_v48, 4  ;;  %v309_v7 = vsel %vm307_vm6, %v308_v14, %v306_v13  ;;  %vm4874_vm6 = vmmov %vm4866_vm13 }
  0x74   : > { %v3388_v33 = vmul.f32 0.04, %v1469_v23  ;;  %v1035_v39 = vadd.f32 %v935_v29, %v3288_v9  ;;  %v1844_v30 = vsel %vm1838_vm8, 2143289344, %v2653_v28  ;;  %vm4873_vm7 = vcmask 1045504   ;;  %vm4875_vm8 = vmmov %vm4870_vm14 }
  0x75   : > { %v1080_v27 = vsel %vm4873_vm7, %v1077_v26, %v1079_v25  ;;  %v504_v52 = vadd.f32 %v3301_v41, %v3158_v32  ;;  %v505_v63 = vadd.f32 %v473_v1, %v3161_v46  ;;  %vm1840_vm15 = vcmp.eq.f32.partialorder %v3197_v50, 1065353216 }
  0x76   : > { %v1845_v9 = vsel %vm1839_vm9, 0, %v1844_v30  ;;  %v1888_v20 = vmul.f32 0.4, %v2655_v44  ;;  %v1912_v19 = vand.u32 2147483647, %v3388_v33  ;;  %v1225_v45 = vsel %vm4874_vm6, %v1222_v31, %v1224_v59 }
  0x77   : > { %v1850_v14 = vsel %vm3374_vm12, 2139095040, %v1845_v9  ;;  %v3409_v26 = vmul.f32 %v302_v42, %v3179_v61  ;;  %v3412_v41 = vmul.f32 %v309_v7, %v3183_v60  ;;  %v1180_v24 = vadd.f32 %v1080_v27, %v1035_v39 }
  0x78   : > { %v1854_v53 = vsel %vm1851_vm5, 2143289344, %v1850_v14  ;;  %2658 = vpow2.f32 %v1888_v20  ;;  %v1370_v16 = vsel %vm4875_vm8, %v1367_v37, %v1369_v35  ;;  %v536_v31 = vadd.f32 %v504_v52, %v3232_v51 }
  0x79   : > { %v1855_v0 = vsel %vm1840_vm15, 1065353216, %v1854_v53  ;;  %2660 = vlog2.f32 %v1912_v19  ;;  %v537_v61 = vadd.f32 %v505_v63, %v3235_v49  ;;  %v1325_v50 = vadd.f32 %v1225_v45, %v1180_v24 }
  0x7a   : > { %v1562_v60 = vadd.f32 %v1855_v0, %v2894_v3  ;;  %vm1864_vm9 = vcmp.lt.f32.partialorder %v3242_v6, 0  ;;  %vm1865_vm10 = vcmp.eq.f32.partialorder %v3242_v6, 0  ;;  %v568_v8 = vadd.f32 %v536_v31, %v3409_v26 }
  0x7b   : > { %v569_v40 = vadd.f32 %v537_v61, %v3412_v41  ;;  %vm1866_vm5 = vcmp.eq.f32.partialorder %v3242_v6, 1065353216  ;;  %v1470_v15 = vadd.f32 %v1370_v16, %v1325_v50  ;;  %2662 = vrsqrt.f32 %v3423_v54 }
  0x7c   : > { %v1594_v38 = vmul.f32 0.5, %v1562_v60  ;;  %vm1877_vm13 = vcmp.ne.f32.partialorder %v3242_v6, %v3242_v6  ;;  %v612_v3 = vrot.slane %v568_v8, 2  ;;  %v669_v10 = vrot.slane %v568_v8, 6 }
  0x7d   : > { %v670_v21 = vrot.slane %v569_v40, 6  ;;  %vm3441_vm0 = vcmp.eq.f32.partialorder %v1860_v11, 2139095040  ;;  %v3445_v37 = vmul.f32 0.04, %v1470_v15  ;;  %v757_v56 = vrot.slane %v569_v40, 4 }
  0x7e   : > { %1627 = vst.msk [vmem:[%s3343_s16 + $0x18] sm:$0xff] %vm1623_vm4, %v1594_v38  ;;  %2664 = vrsqrt.f32 %v3431_v58  ;;  %vm1890_vm11 = vcmp.lt.f32.partialorder %v3277_v55, 0  ;;  %vm1891_vm3 = vcmp.eq.f32.partialorder %v3277_v55, 0  ;;  %vm4878_vm14 = vcmask 1040384  }
  0x7f   : > { %v3451_v57 = vsel %vm4855_vm1, %v669_v10, %v670_v21  ;;  %v822_v48 = vsel %vm4878_vm14, %v612_v3, %v568_v8  ;;  %v2657_v13 = vpop.eup %2656  ;;  %vm1892_vm12 = vcmp.eq.f32.partialorder %v3277_v55, 1065353216  ;;  %vm3457_vm7 = vcmp.eq.f32.partialorder %v1886_v12, 2139095040 }
  0x80   : > { %vm1903_vm15 = vcmp.ne.f32.partialorder %v3277_v55, %v3277_v55  ;;  %v1938_v1 = vand.u32 2147483647, %v3445_v37  ;;  %v1870_v62 = vsel %vm1864_vm9, 2143289344, %v2657_v13  ;;  %v838_v47 = vsel %vm4855_vm1, %v822_v48, %v669_v10 }
  0x81   : > { %v937_v43 = vrot.slane %v3451_v57, 1  ;;  %v789_v34 = vrot.slane %v569_v40, 2  ;;  %v1871_v36 = vsel %vm1865_vm10, 0, %v1870_v62  ;;  %v936_v12 = vrot.slane %v838_v47, 1 }
  0x82   : > { %2666 = vlog2.f32 %v1938_v1  ;;  %v854_v2 = vsel %vm4855_vm1, %v670_v21, %v757_v56  ;;  %v1876_v23 = vsel %vm3441_vm0, 2139095040, %v1871_v36  ;;  %v1081_v25 = vrot.slane %v838_v47, 2 }
  0x83   : > { %v1082_v29 = vrot.slane %v3451_v57, 2  ;;  %v1226_v59 = vrot.slane %v838_v47, 3  ;;  %vm312_vm6 = vcmp.eq.f32.partialorder %v3423_v54, inf  ;;  %v1880_v42 = vsel %vm1877_vm13, 2143289344, %v1876_v23 }
  0x84   : > { %v938_v28 = vsel %vm915_vm2, %v936_v12, %v937_v43  ;;  %v1227_v39 = vrot.slane %v3451_v57, 3  ;;  %v1371_v35 = vrot.slane %v838_v47, 4  ;;  %v1881_v44 = vsel %vm1866_vm5, 1065353216, %v1880_v42 }
  0x85   : > { %v2659_v7 = vpop.eup %2658  ;;  %v1036_v30 = vadd.f32 %v938_v28, %v838_v47  ;;  %vm4881_vm8 = vcmask 1045504   ;;  %v1372_v52 = vrot.slane %v3451_v57, 4  ;;  %v1563_v9 = vadd.f32 %v1881_v44, %v2897_v4  ;;  %v3530_v28 = vld [vmem:[%s2881_s13 + $0x80] sm:$0xff] }
  0x86   : > { %v1083_v27 = vsel %vm4881_vm8, %v1081_v25, %v1082_v29  ;;  %v2661_v63 = vpop.eup %2660  ;;  %v1896_v20 = vsel %vm1890_vm11, 2143289344, %v2659_v7  ;;  %vm4882_vm9 = vcmask 1044480   ;;  %vm4883_vm10 = vcmask 1042432   ;;  %vm4885_vm13 = vmmov %vm4881_vm8 }
  0x87   : > { %v1228_v14 = vsel %vm4882_vm9, %v1226_v59, %v1227_v39  ;;  %v871_v45 = vsel %vm4883_vm10, %v854_v2, %v789_v34  ;;  %v1897_v6 = vsel %vm1891_vm3, 0, %v1896_v20  ;;  %v1914_v53 = vmul.f32 0.4, %v2661_v63  ;;  %vm4886_vm3 = vmmov %vm4882_vm9 }
  0x88   : > { %v1181_v24 = vadd.f32 %v1083_v27, %v1036_v30  ;;  %vm4884_vm5 = vcmask 1043456   ;;  %v1595_v0 = vmul.f32 0.5, %v1563_v9  ;;  %v1902_v31 = vsel %vm3457_vm7, 2139095040, %v1897_v6  ;;  %v2663_v60 = vpop.eup %2662  ;;  %v3544_v30 = vld [vmem:[%s2881_s13 + $0x88] sm:$0xff] }
  0x89   : > { %v1373_v16 = vsel %vm4884_vm5, %v1371_v35, %v1372_v52  ;;  %v939_v4 = vrot.slane %v871_v45, 1  ;;  %v1084_v61 = vrot.slane %v871_v45, 2  ;;  %v1906_v50 = vsel %vm1903_vm15, 2143289344, %v1902_v31 }
  0x8a   : > { %2668 = vpow2.f32 %v1914_v53  ;;  %v1326_v8 = vadd.f32 %v1228_v14, %v1181_v24  ;;  %v1229_v40 = vrot.slane %v871_v45, 3  ;;  %1628 = vst.msk [vmem:[%s3343_s16 + $0x20] sm:$0xff] %vm1623_vm4, %v1595_v0  ;;  %v1907_v38 = vsel %vm1892_vm12, 1065353216, %v1906_v50  ;;  %vm4887_vm12 = vmmov %vm4884_vm5 }
  0x8b   : > { %v940_v15 = vsel %vm915_vm2, %v937_v43, %v939_v4  ;;  %v1085_v3 = vsel %vm4885_vm13, %v1082_v29, %v1084_v61  ;;  %vm314_vm0 = vcmp.eq.f32.partialorder %v3423_v54, 0.0  ;;  %v2665_v10 = vpop.eup %2664  ;;  %v1564_v21 = vadd.f32 %v1907_v38, %v2901_v5 }
  0x8c   : > { %v1471_v18 = vadd.f32 %v1373_v16, %v1326_v8  ;;  %v1037_v56 = vadd.f32 %v940_v15, %v3451_v57  ;;  %v1374_v48 = vrot.slane %v871_v45, 4  ;;  %v311_v13 = vmul.f32 %v2663_v60, %v3423_v54 }
  0x8d   : > { %v315_v11 = vand.u32 2147483648, %v3423_v54  ;;  %v318_v55 = vmul.f32 %v2665_v10, %v3431_v58  ;;  %vm319_vm11 = vcmp.eq.f32.partialorder %v3431_v58, inf  ;;  %v1596_v62 = vmul.f32 0.5, %v1564_v21 }
  0x8e   : > { %v3512_v47 = vmul.f32 0.04, %v1471_v18  ;;  %v1182_v43 = vadd.f32 %v1085_v3, %v1037_v56  ;;  %v1230_v5 = vsel %vm4886_vm3, %v1227_v39, %v1229_v40  ;;  %v313_v57 = vsel %vm312_vm6, %v3423_v54, %v311_v13  ;;  %v2800_v56 = vld [vmem:[%s2881_s13 + $0x30] sm:$0xff] }
  0x8f   : > { %vm321_vm14 = vcmp.eq.f32.partialorder %v3431_v58, 0.0  ;;  %v322_v34 = vand.u32 2147483648, %v3431_v58  ;;  %v474_v36 = vadd.f32 %v3158_v32, %v3038_v17  ;;  %v2667_v12 = vpop.eup %2666  ;;  %1629 = vst.msk [vmem:[%s3343_s16 + $0x28] sm:$0xff] %vm1623_vm4, %v1596_v62  ;;  %v1375_v23 = vsel %vm4887_vm12, %v1372_v52, %v1374_v48 }
  0x90   : > { %v1964_v2 = vand.u32 2147483647, %v3512_v47  ;;  %v320_v25 = vsel %vm319_vm11, %v3431_v58, %v318_v55  ;;  %v475_v29 = vadd.f32 %v3161_v46, %v3049_v22  ;;  %v1940_v59 = vmul.f32 0.4, %v2667_v12 }
  0x91   : > { %v1327_v42 = vadd.f32 %v1230_v5, %v1182_v43  ;;  %v194_v17 = vmul.f32 %v3423_v54, %v3423_v54  ;;  %v195_v39 = vmul.f32 %v3431_v58, %v3431_v58  ;;  %v316_v35 = vsel %vm314_vm0, %v315_v11, %v313_v57 }
  0x92   : > { %2670 = vlog2.f32 %v1964_v2  ;;  %v323_v22 = vsel %vm321_vm14, %v322_v34, %v320_v25  ;;  %v506_v44 = vadd.f32 %v474_v36, %v3232_v51  ;;  %vm1916_vm7 = vcmp.lt.f32.partialorder %v3388_v33, 0 }
  0x93   : > { %2672 = vpow2.f32 %v1940_v59  ;;  %v1472_v7 = vadd.f32 %v1375_v23, %v1327_v42  ;;  %vm1917_vm15 = vcmp.eq.f32.partialorder %v3388_v33, 0  ;;  %v507_v27 = vadd.f32 %v475_v29, %v3235_v49 }
  0x94   : > { %2674 = vrsqrt.f32 %v3530_v28  ;;  %vm1918_vm6 = vcmp.eq.f32.partialorder %v3388_v33, 1065353216  ;;  %vm1929_vm8 = vcmp.ne.f32.partialorder %v3388_v33, %v3388_v33  ;;  %v538_v58 = vadd.f32 %v506_v44, %v3409_v26 }
  0x95   : > { %v3553_v54 = vmul.f32 0.04, %v1472_v7  ;;  %v3556_v52 = vmul.f32 %v316_v35, %v194_v17  ;;  %v3558_v63 = vmul.f32 %v323_v22, %v195_v39  ;;  %v539_v9 = vadd.f32 %v507_v27, %v3412_v41 }
  0x96   : > { %2676 = vrsqrt.f32 %v3544_v30  ;;  %vm3564_vm9 = vcmp.eq.f32.partialorder %v1912_v19, 2139095040  ;;  %vm1942_vm10 = vcmp.lt.f32.partialorder %v3445_v37, 0  ;;  %vm1943_vm5 = vcmp.eq.f32.partialorder %v3445_v37, 0 }
  0x97   : > { %v2669_v20 = vpop.eup %2668  ;;  %v1990_v45 = vand.u32 2147483647, %v3553_v54  ;;  %vm3575_vm13 = vcmp.eq.f32.partialorder %v1938_v1, 2139095040  ;;  %v570_v19 = vadd.f32 %v538_v58, %v3556_v52  ;;  %v571_v24 = vadd.f32 %v539_v9, %v3558_v63 }
  0x98   : > { %v1922_v6 = vsel %vm1916_vm7, 2143289344, %v2669_v20  ;;  %v3583_v16 = vmul.f32 %v3530_v28, %v3530_v28  ;;  %vm1955_vm0 = vcmp.ne.f32.partialorder %v3445_v37, %v3445_v37  ;;  %v3593_v1 = vmul.f32 %v3544_v30, %v3544_v30 }
  0x99   : > { %v1923_v0 = vsel %vm1917_vm15, 0, %v1922_v6  ;;  %2678 = vlog2.f32 %v1990_v45  ;;  %v329_v31 = vand.u32 2147483648, %v3530_v28  ;;  %vm1944_vm11 = vcmp.eq.f32.partialorder %v3445_v37, 1065353216 }
  0x9a   : > { %v1928_v4 = vsel %vm3564_vm9, 2139095040, %v1923_v0  ;;  %v613_v61 = vrot.slane %v570_v19, 2  ;;  %v672_v60 = vrot.slane %v570_v19, 6  ;;  %v673_v50 = vrot.slane %v571_v24, 6 }
  0x9b   : > { %v1932_v8 = vsel %vm1929_vm8, 2143289344, %v1928_v4  ;;  %v758_v40 = vrot.slane %v571_v24, 4  ;;  %v790_v38 = vrot.slane %v571_v24, 2  ;;  %vm326_vm3 = vcmp.eq.f32.partialorder %v3530_v28, inf }
  0x9c   : > { %v336_v15 = vand.u32 2147483648, %v3544_v30  ;;  %v1933_v3 = vsel %vm1918_vm6, 1065353216, %v1932_v8  ;;  %v674_v10 = vsel %vm4855_vm1, %v672_v60, %v673_v50  ;;  %vm4892_vm14 = vcmask 1040384  }
  0x9d   : > { %v823_v21 = vsel %vm4892_vm14, %v613_v61, %v570_v19  ;;  %vm328_vm12 = vcmp.eq.f32.partialorder %v3530_v28, 0.0  ;;  %v476_v18 = vadd.f32 %v3232_v51, %v3158_v32  ;;  %v1565_v48 = vadd.f32 %v2800_v56, %v1933_v3 }
  0x9e   : > { %v839_v13 = vsel %vm4855_vm1, %v823_v21, %v672_v60  ;;  %v942_v11 = vrot.slane %v674_v10, 1  ;;  %v1087_v55 = vrot.slane %v674_v10, 2  ;;  %vm333_vm7 = vcmp.eq.f32.partialorder %v3544_v30, inf }
  0x9f   : > { %v941_v62 = vrot.slane %v839_v13, 1  ;;  %v1086_v33 = vrot.slane %v839_v13, 2  ;;  %v1231_v43 = vrot.slane %v839_v13, 3  ;;  %v1232_v5 = vrot.slane %v674_v10, 3  ;;  %v2671_v57 = vpop.eup %2670 }
  0xa0   : > { %vm335_vm15 = vcmp.eq.f32.partialorder %v3544_v30, 0.0  ;;  %v1597_v34 = vmul.f32 0.5, %v1565_v48  ;;  %v1376_v36 = vrot.slane %v839_v13, 4  ;;  %v1377_v12 = vrot.slane %v674_v10, 4  ;;  %v2673_v23 = vpop.eup %2672 }
  0xa1   : > { %v855_v32 = vsel %vm4855_vm1, %v673_v50, %v758_v40  ;;  %v1966_v25 = vmul.f32 0.4, %v2671_v57  ;;  %v943_v29 = vsel %vm915_vm2, %v941_v62, %v942_v11  ;;  %vm4893_vm6 = vcmask 1045504   ;;  %v2675_v17 = vpop.eup %2674 }
  0xa2   : > { %v1088_v59 = vsel %vm4893_vm6, %v1086_v33, %v1087_v55  ;;  %vm4894_vm8 = vcmask 1044480   ;;  %1630 = vst.msk [vmem:[%s3343_s16 + $0x30] sm:$0xff] %vm1623_vm4, %v1597_v34  ;;  %v1948_v39 = vsel %vm1942_vm10, 2143289344, %v2673_v23  ;;  %v1038_v35 = vadd.f32 %v943_v29, %v839_v13  ;;  %vm4897_vm10 = vmmov %vm4893_vm6 }
  0xa3   : > { %v1233_v42 = vsel %vm4894_vm8, %v1231_v43, %v1232_v5  ;;  %vm4895_vm9 = vcmask 1043456   ;;  %vm4896_vm14 = vcmask 1042432   ;;  %v1949_v44 = vsel %vm1943_vm5, 0, %v1948_v39  ;;  %v2677_v9 = vpop.eup %2676  ;;  %vm4898_vm5 = vmmov %vm4894_vm8 }
  0xa4   : > { %v1378_v7 = vsel %vm4895_vm9, %v1376_v36, %v1377_v12  ;;  %v872_v22 = vsel %vm4896_vm14, %v855_v32, %v790_v38  ;;  %2680 = vpow2.f32 %v1966_v25  ;;  %v1954_v20 = vsel %vm3575_vm13, 2139095040, %v1949_v44  ;;  %v2801_v38 = vld [vmem:[%s2881_s13 + $0x38] sm:$0xff]  ;;  %vm4899_vm13 = vmmov %vm4895_vm9 }
  0xa5   : > { %v944_v27 = vrot.slane %v872_v22, 1  ;;  %v1089_v58 = vrot.slane %v872_v22, 2  ;;  %v1183_v14 = vadd.f32 %v1088_v59, %v1038_v35  ;;  %v1234_v6 = vrot.slane %v872_v22, 3 }
  0xa6   : > { %v1379_v19 = vrot.slane %v872_v22, 4  ;;  %v1958_v24 = vsel %vm1955_vm0, 2143289344, %v1954_v20  ;;  %v325_v61 = vmul.f32 %v2675_v17, %v3530_v28  ;;  %v477_v53 = vadd.f32 %v3235_v49, %v3161_v46  ;;  %v2679_v40 = vpop.eup %2678 }
  0xa7   : > { %v945_v0 = vsel %vm915_vm2, %v942_v11, %v944_v27  ;;  %v1090_v4 = vsel %vm4897_vm10, %v1087_v55, %v1089_v58  ;;  %v1959_v60 = vsel %vm1944_vm11, 1065353216, %v1958_v24  ;;  %v1328_v50 = vadd.f32 %v1233_v42, %v1183_v14 }
  0xa8   : > { %v1039_v8 = vadd.f32 %v945_v0, %v674_v10  ;;  %v1566_v3 = vadd.f32 %v2801_v38, %v1959_v60  ;;  %v1235_v21 = vsel %vm4898_vm5, %v1232_v5, %v1234_v6  ;;  %v327_v56 = vsel %vm326_vm3, %v3530_v28, %v325_v61 }
  0xa9   : > { %v332_v48 = vmul.f32 %v2677_v9, %v3544_v30  ;;  %v1992_v13 = vmul.f32 0.4, %v2679_v40  ;;  %v1473_v37 = vadd.f32 %v1378_v7, %v1328_v50  ;;  %v330_v46 = vsel %vm328_vm12, %v329_v31, %v327_v56  ;;  %v3722_v40 = vld [vmem:[%s2881_s13 + $0x98] sm:$0xff] }
  0xaa   : > { %v1184_v11 = vadd.f32 %v1090_v4, %v1039_v8  ;;  %v1598_v10 = vmul.f32 0.5, %v1566_v3  ;;  %v1380_v55 = vsel %vm4899_vm13, %v1377_v12, %v1379_v19  ;;  %v508_v33 = vadd.f32 %v476_v18, %v3409_v26  ;;  %v2802_v19 = vld [vmem:[%s2881_s13 + $0x40] sm:$0xff] }
  0xab   : > { %v334_v62 = vsel %vm333_vm7, %v3544_v30, %v332_v48  ;;  %2682 = vpow2.f32 %v1992_v13  ;;  %v3654_v43 = vmul.f32 0.04, %v1473_v37  ;;  %v3663_v31 = vmul.f32 %v330_v46, %v3583_v16 }
  0xac   : > { %v1329_v5 = vadd.f32 %v1235_v21, %v1184_v11  ;;  %v337_v28 = vsel %vm335_vm15, %v336_v15, %v334_v62  ;;  %1631 = vst.msk [vmem:[%s3343_s16 + $0x38] sm:$0xff] %vm1623_vm4, %v1598_v10  ;;  %v509_v57 = vadd.f32 %v477_v53, %v3412_v41  ;;  %v540_v34 = vadd.f32 %v508_v33, %v3556_v52  ;;  %v3674_v15 = vld [vmem:[%s2881_s13 + $0x90] sm:$0xff] }
  0xad   : > { %v2016_v18 = vand.u32 2147483647, %v3654_v43  ;;  %v3669_v12 = vmul.f32 %v337_v28, %v3593_v1  ;;  %vm1968_vm0 = vcmp.lt.f32.partialorder %v3512_v47, 0  ;;  %vm1969_vm11 = vcmp.eq.f32.partialorder %v3512_v47, 0 }
  0xae   : > { %v1474_v36 = vadd.f32 %v1380_v55, %v1329_v5  ;;  %v541_v32 = vadd.f32 %v509_v57, %v3558_v63  ;;  %v572_v30 = vadd.f32 %v540_v34, %v3663_v31  ;;  %vm1970_vm3 = vcmp.eq.f32.partialorder %v3512_v47, 1065353216 }
  0xaf   : > { %2684 = vlog2.f32 %v2016_v18  ;;  %vm3686_vm12 = vcmp.eq.f32.partialorder %v1964_v2, 2139095040  ;;  %vm1981_vm7 = vcmp.ne.f32.partialorder %v3512_v47, %v3512_v47  ;;  %vm1994_vm15 = vcmp.lt.f32.partialorder %v3553_v54, 0 }
  0xb0   : > { %v3680_v16 = vmul.f32 0.04, %v1474_v36  ;;  %v573_v23 = vadd.f32 %v541_v32, %v3669_v12  ;;  %v614_v25 = vrot.slane %v572_v30, 2  ;;  %v675_v59 = vrot.slane %v572_v30, 6 }
  0xb1   : > { %v2681_v1 = vpop.eup %2680  ;;  %2686 = vrsqrt.f32 %v3674_v15  ;;  %vm1995_vm6 = vcmp.eq.f32.partialorder %v3553_v54, 0  ;;  %vm2007_vm8 = vcmp.ne.f32.partialorder %v3553_v54, %v3553_v54  ;;  %vm3702_vm9 = vcmp.eq.f32.partialorder %v1990_v45, 2139095040 }
  0xb2   : > { %v1974_v42 = vsel %vm1968_vm0, 2143289344, %v2681_v1  ;;  %v2042_v17 = vand.u32 2147483647, %v3680_v16  ;;  %v676_v2 = vrot.slane %v573_v23, 6  ;;  %vm4904_vm14 = vcmask 1040384  }
  0xb3   : > { %v1975_v39 = vsel %vm1969_vm11, 0, %v1974_v42  ;;  %v824_v22 = vsel %vm4904_vm14, %v614_v25, %v572_v30  ;;  %v759_v9 = vrot.slane %v573_v23, 4  ;;  %v791_v47 = vrot.slane %v573_v23, 2  ;;  %v2803_v23 = vld [vmem:[%s2881_s13 + $0x48] sm:$0xff] }
  0xb4   : > { %v1980_v35 = vsel %vm3686_vm12, 2139095040, %v1975_v39  ;;  %2688 = vlog2.f32 %v2042_v17  ;;  %v3710_v27 = vsel %vm4855_vm1, %v675_v59, %v676_v2  ;;  %v840_v58 = vsel %vm4855_vm1, %v824_v22, %v675_v59 }
  0xb5   : > { %v1984_v44 = vsel %vm1981_vm7, 2143289344, %v1980_v35  ;;  %v946_v45 = vrot.slane %v840_v58, 1  ;;  %v947_v14 = vrot.slane %v3710_v27, 1  ;;  %v1091_v6 = vrot.slane %v840_v58, 2 }
  0xb6   : > { %v1985_v20 = vsel %vm1970_vm3, 1065353216, %v1984_v44  ;;  %v1092_v0 = vrot.slane %v3710_v27, 2  ;;  %v1236_v4 = vrot.slane %v840_v58, 3  ;;  %v1237_v61 = vrot.slane %v3710_v27, 3  ;;  %vm4908_vm3 = vmmov %vm4897_vm10 }
  0xb7   : > { %v1567_v24 = vadd.f32 %v2802_v19, %v1985_v20  ;;  %v948_v50 = vsel %vm915_vm2, %v946_v45, %v947_v14  ;;  %v1381_v8 = vrot.slane %v840_v58, 4  ;;  %v1382_v53 = vrot.slane %v3710_v27, 4 }
  0xb8   : > { %v2683_v60 = vpop.eup %2682  ;;  %v1040_v21 = vadd.f32 %v948_v50, %v840_v58  ;;  %v1093_v56 = vsel %vm4897_vm10, %v1091_v6, %v1092_v0  ;;  %vm1996_vm5 = vcmp.eq.f32.partialorder %v3553_v54, 1065353216  ;;  %vm4905_vm13 = vcmask 1044480  }
  0xb9   : > { %v1599_v38 = vmul.f32 0.5, %v1567_v24  ;;  %v2000_v3 = vsel %vm1994_vm15, 2143289344, %v2683_v60  ;;  %v1238_v13 = vsel %vm4905_vm13, %v1236_v4, %v1237_v61  ;;  %v856_v37 = vsel %vm4855_vm1, %v676_v2, %v759_v9  ;;  %vm4909_vm15 = vmmov %vm4905_vm13  ;;  %v3787_v60 = vld [vmem:[%s2881_s13 + $0xa8] sm:$0xff] }
  0xba   : > { %v2001_v48 = vsel %vm1995_vm6, 0, %v2000_v3  ;;  %v1185_v46 = vadd.f32 %v1093_v56, %v1040_v21  ;;  %vm4906_vm0 = vcmask 1042432   ;;  %2690 = vrsqrt.f32 %v3722_v40 }
  0xbb   : > { %1632 = vst.msk [vmem:[%s3343_s16 + $0x40] sm:$0xff] %vm1623_vm4, %v1599_v38  ;;  %v2006_v11 = vsel %vm3702_vm9, 2139095040, %v2001_v48  ;;  %v873_v10 = vsel %vm4906_vm0, %v856_v37, %v791_v47  ;;  %vm4907_vm11 = vcmask 1043456   ;;  %vm340_vm12 = vcmp.eq.f32.partialorder %v3674_v15, inf }
  0xbc   : > { %v2685_v55 = vpop.eup %2684  ;;  %v2010_v62 = vsel %vm2007_vm8, 2143289344, %v2006_v11  ;;  %v1383_v33 = vsel %vm4907_vm11, %v1381_v8, %v1382_v53  ;;  %v949_v5 = vrot.slane %v873_v10, 1  ;;  %v1094_v28 = vrot.slane %v873_v10, 2  ;;  %vm4910_vm6 = vmmov %vm4907_vm11 }
  0xbd   : > { %v2011_v57 = vsel %vm1996_vm5, 1065353216, %v2010_v62  ;;  %v2018_v34 = vmul.f32 0.4, %v2685_v55  ;;  %v1330_v36 = vadd.f32 %v1238_v13, %v1185_v46  ;;  %v1239_v32 = vrot.slane %v873_v10, 3 }
  0xbe   : > { %v2687_v30 = vpop.eup %2686  ;;  %v1568_v25 = vadd.f32 %v2803_v23, %v2011_v57  ;;  %v950_v1 = vsel %vm915_vm2, %v947_v14, %v949_v5  ;;  %v1095_v29 = vsel %vm4908_vm3, %v1092_v0, %v1094_v28  ;;  %v1384_v42 = vrot.slane %v873_v10, 4  ;;  %v3774_v0 = vld [vmem:[%s2881_s13 + $0xa0] sm:$0xff] }
  0xbf   : > { %2692 = vpow2.f32 %v2018_v34  ;;  %v1475_v54 = vadd.f32 %v1383_v33, %v1330_v36  ;;  %v1041_v59 = vadd.f32 %v950_v1, %v3710_v27  ;;  %v339_v2 = vmul.f32 %v2687_v30, %v3674_v15 }
  0xc0   : > { %v1600_v39 = vmul.f32 0.5, %v1568_v25  ;;  %vm342_vm7 = vcmp.eq.f32.partialorder %v3674_v15, 0.0  ;;  %v343_v35 = vand.u32 2147483648, %v3674_v15  ;;  %v1240_v58 = vsel %vm4909_vm15, %v1237_v61, %v1239_v32 }
  0xc1   : > { %v2689_v7 = vpop.eup %2688  ;;  %v3750_v22 = vmul.f32 0.04, %v1475_v54  ;;  %v1186_v44 = vadd.f32 %v1095_v29, %v1041_v59  ;;  %v478_v9 = vadd.f32 %v3409_v26, %v3232_v51  ;;  %v341_v20 = vsel %vm340_vm12, %v3674_v15, %v339_v2 }
  0xc2   : > { %1633 = vst.msk [vmem:[%s3343_s16 + $0x48] sm:$0xff] %vm1623_vm4, %v1600_v39  ;;  %v2044_v27 = vmul.f32 0.4, %v2689_v7  ;;  %v479_v45 = vadd.f32 %v3412_v41, %v3235_v49  ;;  %v1385_v6 = vsel %vm4910_vm6, %v1382_v53, %v1384_v42  ;;  %v198_v19 = vmul.f32 %v3674_v15, %v3674_v15 }
  0xc3   : > { %v2068_v14 = vand.u32 2147483647, %v3750_v22  ;;  %v1331_v51 = vadd.f32 %v1240_v58, %v1186_v44  ;;  %v344_v24 = vsel %vm342_vm7, %v343_v35, %v341_v20  ;;  %vm2020_vm8 = vcmp.lt.f32.partialorder %v3654_v43, 0  ;;  %v2804_v44 = vld [vmem:[%s2881_s13 + $0x50] sm:$0xff] }
  0xc4   : > { %2694 = vpow2.f32 %v2044_v27  ;;  %vm2021_vm9 = vcmp.eq.f32.partialorder %v3654_v43, 0  ;;  %v510_v49 = vadd.f32 %v478_v9, %v3556_v52  ;;  %vm2022_vm14 = vcmp.eq.f32.partialorder %v3654_v43, 1065353216 }
  0xc5   : > { %2696 = vlog2.f32 %v2068_v14  ;;  %vm3779_vm10 = vcmp.eq.f32.partialorder %v2016_v18, 2139095040  ;;  %vm2033_vm5 = vcmp.ne.f32.partialorder %v3654_v43, %v3654_v43  ;;  %v1476_v15 = vadd.f32 %v1385_v6, %v1331_v51 }
  0xc6   : > { %v511_v61 = vadd.f32 %v479_v45, %v3558_v63  ;;  %v199_v50 = vmul.f32 %v3722_v40, %v3722_v40  ;;  %vm347_vm13 = vcmp.eq.f32.partialorder %v3722_v40, inf  ;;  %v3792_v8 = vmul.f32 %v344_v24, %v198_v19 }
  0xc7   : > { %v542_v18 = vadd.f32 %v510_v49, %v3663_v31  ;;  %v2691_v53 = vpop.eup %2690  ;;  %vm2046_vm0 = vcmp.lt.f32.partialorder %v3680_v16, 0  ;;  %v3796_v47 = vmul.f32 0.04, %v1476_v15  ;;  %v350_v38 = vand.u32 2147483648, %v3722_v40 }
  0xc8   : > { %2698 = vrsqrt.f32 %v3774_v0  ;;  %v346_v3 = vmul.f32 %v2691_v53, %v3722_v40  ;;  %vm349_vm11 = vcmp.eq.f32.partialorder %v3722_v40, 0.0  ;;  %vm2047_vm3 = vcmp.eq.f32.partialorder %v3680_v16, 0 }
  0xc9   : > { %v574_v21 = vadd.f32 %v542_v18, %v3792_v8  ;;  %2700 = vrsqrt.f32 %v3787_v60  ;;  %vm2059_vm12 = vcmp.ne.f32.partialorder %v3680_v16, %v3680_v16  ;;  %v2094_v56 = vand.u32 2147483647, %v3796_v47 }
  0xca   : > { %v543_v48 = vadd.f32 %v511_v61, %v3669_v12  ;;  %vm2048_vm7 = vcmp.eq.f32.partialorder %v3680_v16, 1065353216  ;;  %v348_v13 = vsel %vm347_vm13, %v3722_v40, %v346_v3  ;;  %v480_v46 = vadd.f32 %v3556_v52, %v3409_v26 }
  0xcb   : > { %v615_v37 = vrot.slane %v574_v21, 2  ;;  %v678_v11 = vrot.slane %v574_v21, 6  ;;  %vm3817_vm15 = vcmp.eq.f32.partialorder %v2042_v17, 2139095040  ;;  %2702 = vlog2.f32 %v2094_v56 }
  0xcc   : > { %v2693_v10 = vpop.eup %2692  ;;  %v351_v62 = vsel %vm349_vm11, %v350_v38, %v348_v13  ;;  %v481_v33 = vadd.f32 %v3558_v63, %v3412_v41  ;;  %vm4915_vm6 = vcmask 1040384   ;;  %v3832_v17 = vmul.f32 %v3774_v0, %v3774_v0  ;;  %v2805_v13 = vld [vmem:[%s2881_s13 + $0x58] sm:$0xff] }
  0xcd   : > { %v2026_v40 = vsel %vm2020_vm8, 2143289344, %v2693_v10  ;;  %v3827_v5 = vmul.f32 %v351_v62, %v199_v50  ;;  %v825_v26 = vsel %vm4915_vm6, %v615_v37, %v574_v21  ;;  %v3839_v34 = vmul.f32 %v3787_v60, %v3787_v60 }
  0xce   : > { %v2027_v28 = vsel %vm2021_vm9, 0, %v2026_v40  ;;  %v841_v57 = vsel %vm4855_vm1, %v825_v26, %v678_v11  ;;  %v357_v41 = vand.u32 2147483648, %v3774_v0  ;;  %v364_v30 = vand.u32 2147483648, %v3787_v60 }
  0xcf   : > { %v2032_v36 = vsel %vm3779_vm10, 2139095040, %v2027_v28  ;;  %v575_v32 = vadd.f32 %v543_v48, %v3827_v5  ;;  %v512_v23 = vadd.f32 %v480_v46, %v3663_v31  ;;  %v951_v1 = vrot.slane %v841_v57, 1 }
  0xd0   : > { %v2036_v25 = vsel %vm2033_vm5, 2143289344, %v2032_v36  ;;  %v1096_v29 = vrot.slane %v841_v57, 2  ;;  %vm354_vm8 = vcmp.eq.f32.partialorder %v3774_v0, inf  ;;  %v513_v54 = vadd.f32 %v481_v33, %v3669_v12 }
  0xd1   : > { %v2695_v59 = vpop.eup %2694  ;;  %v2037_v42 = vsel %vm2022_vm14, 1065353216, %v2036_v25  ;;  %v679_v39 = vrot.slane %v575_v32, 6  ;;  %v1241_v2 = vrot.slane %v841_v57, 3  ;;  %v760_v35 = vrot.slane %v575_v32, 4 }
  0xd2   : > { %vm356_vm9 = vcmp.eq.f32.partialorder %v3774_v0, 0.0  ;;  %vm361_vm10 = vcmp.eq.f32.partialorder %v3787_v60, inf  ;;  %v2697_v7 = vpop.eup %2696  ;;  %v1569_v58 = vadd.f32 %v2804_v44, %v2037_v42  ;;  %v2052_v9 = vsel %vm2046_vm0, 2143289344, %v2695_v59 }
  0xd3   : > { %v1386_v27 = vrot.slane %v841_v57, 4  ;;  %v792_v20 = vrot.slane %v575_v32, 2  ;;  %vm363_vm5 = vcmp.eq.f32.partialorder %v3787_v60, 0.0  ;;  %v2053_v43 = vsel %vm2047_vm3, 0, %v2052_v9 }
  0xd4   : > { %v2070_v45 = vmul.f32 0.4, %v2697_v7  ;;  %v680_v6 = vsel %vm4855_vm1, %v678_v11, %v679_v39  ;;  %v857_v19 = vsel %vm4855_vm1, %v679_v39, %v760_v35  ;;  %v1601_v51 = vmul.f32 0.5, %v1569_v58  ;;  %v3902_v58 = vld [vmem:[%s2881_s13 + $0xb8] sm:$0xff] }
  0xd5   : > { %v2058_v24 = vsel %vm3817_vm15, 2139095040, %v2053_v43  ;;  %v952_v49 = vrot.slane %v680_v6, 1  ;;  %v1097_v4 = vrot.slane %v680_v6, 2  ;;  %v2699_v15 = vpop.eup %2698  ;;  %v1242_v50 = vrot.slane %v680_v6, 3 }
  0xd6   : > { %v2062_v61 = vsel %vm2059_vm12, 2143289344, %v2058_v24  ;;  %2704 = vpow2.f32 %v2070_v45  ;;  %v1387_v18 = vrot.slane %v680_v6, 4  ;;  %v2701_v53 = vpop.eup %2700  ;;  %1634 = vst.msk [vmem:[%s3343_s16 + $0x50] sm:$0xff] %vm1623_vm4, %v1601_v51  ;;  %vm4916_vm14 = vcmask 1045504  }
  0xd7   : > { %v2063_v38 = vsel %vm2048_vm7, 1065353216, %v2062_v61  ;;  %v953_v3 = vsel %vm915_vm2, %v951_v1, %v952_v49  ;;  %v1098_v21 = vsel %vm4916_vm14, %v1096_v29, %v1097_v4  ;;  %vm4917_vm13 = vcmask 1042432   ;;  %vm4920_vm3 = vmmov %vm4916_vm14 }
  0xd8   : > { %v874_v48 = vsel %vm4917_vm13, %v857_v19, %v792_v20  ;;  %v1570_v37 = vadd.f32 %v2805_v13, %v2063_v38  ;;  %v1042_v11 = vadd.f32 %v953_v3, %v841_v57  ;;  %vm4918_vm0 = vcmask 1044480   ;;  %v2703_v40 = vpop.eup %2702 }
  0xd9   : > { %v1243_v46 = vsel %vm4918_vm0, %v1241_v2, %v1242_v50  ;;  %v544_v10 = vadd.f32 %v512_v23, %v3792_v8  ;;  %vm4919_vm11 = vcmask 1043456   ;;  %v954_v62 = vrot.slane %v874_v48, 1  ;;  %v3891_v2 = vld [vmem:[%s2881_s13 + $0xb0] sm:$0xff]  ;;  %vm4921_vm12 = vmmov %vm4918_vm0 }
  0xda   : > { %v1388_v55 = vsel %vm4919_vm11, %v1386_v27, %v1387_v18  ;;  %v1099_v33 = vrot.slane %v874_v48, 2  ;;  %v1244_v16 = vrot.slane %v874_v48, 3  ;;  %v1602_v26 = vmul.f32 0.5, %v1570_v37  ;;  %vm4922_vm7 = vmmov %vm4919_vm11 }
  0xdb   : > { %v1187_v28 = vadd.f32 %v1098_v21, %v1042_v11  ;;  %v353_v36 = vmul.f32 %v2699_v15, %v3774_v0  ;;  %v360_v32 = vmul.f32 %v2701_v53, %v3787_v60  ;;  %v2096_v57 = vmul.f32 0.4, %v2703_v40  ;;  %v2806_v11 = vld [vmem:[%s2881_s13 + $0x60] sm:$0xff] }
  0xdc   : > { %v955_v25 = vsel %vm915_vm2, %v952_v49, %v954_v62  ;;  %v1100_v1 = vsel %vm4920_vm3, %v1097_v4, %v1099_v33  ;;  %v1389_v23 = vrot.slane %v874_v48, 4  ;;  %1635 = vst.msk [vmem:[%s3343_s16 + $0x58] sm:$0xff] %vm1623_vm4, %v1602_v26  ;;  %v545_v39 = vadd.f32 %v513_v54, %v3827_v5 }
  0xdd   : > { %v1332_v29 = vadd.f32 %v1243_v46, %v1187_v28  ;;  %v1043_v59 = vadd.f32 %v955_v25, %v680_v6  ;;  %v355_v42 = vsel %vm354_vm8, %v3774_v0, %v353_v36  ;;  %2706 = vpow2.f32 %v2096_v57 }
  0xde   : > { %v1245_v35 = vsel %vm4921_vm12, %v1242_v50, %v1244_v16  ;;  %v358_v7 = vsel %vm356_vm9, %v357_v41, %v355_v42  ;;  %v362_v44 = vsel %vm361_vm10, %v3787_v60, %v360_v32  ;;  %v1390_v43 = vsel %vm4922_vm7, %v1387_v18, %v1389_v23 }
  0xdf   : > { %v1477_v9 = vadd.f32 %v1388_v55, %v1332_v29  ;;  %v1188_v27 = vadd.f32 %v1100_v1, %v1043_v59  ;;  %v365_v54 = vsel %vm363_vm5, %v364_v30, %v362_v44  ;;  %v3909_v20 = vmul.f32 %v358_v7, %v3832_v17 }
  0xe0   : > { %v3913_v0 = vmul.f32 %v365_v54, %v3839_v34  ;;  %2708 = vrsqrt.f32 %v3891_v2  ;;  %vm2072_vm15 = vcmp.lt.f32.partialorder %v3750_v22, 0  ;;  %vm2073_vm6 = vcmp.eq.f32.partialorder %v3750_v22, 0 }
  0xe1   : > { %v3916_v41 = vmul.f32 0.04, %v1477_v9  ;;  %v1333_v45 = vadd.f32 %v1245_v35, %v1188_v27  ;;  %v576_v6 = vadd.f32 %v544_v10, %v3909_v20  ;;  %2710 = vrsqrt.f32 %v3902_v58 }
  0xe2   : > { %v577_v60 = vadd.f32 %v545_v39, %v3913_v0  ;;  %vm2074_vm8 = vcmp.eq.f32.partialorder %v3750_v22, 1065353216  ;;  %vm2085_vm9 = vcmp.ne.f32.partialorder %v3750_v22, %v3750_v22  ;;  %vm3929_vm10 = vcmp.eq.f32.partialorder %v2068_v14, 2139095040 }
  0xe3   : > { %v2120_v17 = vand.u32 2147483647, %v3916_v41  ;;  %v2705_v34 = vpop.eup %2704  ;;  %v1478_v19 = vadd.f32 %v1390_v43, %v1333_v45  ;;  %v616_v51 = vrot.slane %v576_v6, 2  ;;  %v681_v24 = vrot.slane %v576_v6, 6 }
  0xe4   : > { %v2078_v49 = vsel %vm2072_vm15, 2143289344, %v2705_v34  ;;  %vm2098_vm5 = vcmp.lt.f32.partialorder %v3796_v47, 0  ;;  %v682_v4 = vrot.slane %v577_v60, 6  ;;  %vm2099_vm14 = vcmp.eq.f32.partialorder %v3796_v47, 0 }
  0xe5   : > { %2712 = vlog2.f32 %v2120_v17  ;;  %v2079_v15 = vsel %vm2073_vm6, 0, %v2078_v49  ;;  %v3937_v61 = vmul.f32 0.04, %v1478_v19  ;;  %vm4925_vm13 = vcmask 1040384  }
  0xe6   : > { %v826_v14 = vsel %vm4925_vm13, %v616_v51, %v576_v6  ;;  %v2084_v50 = vsel %vm3929_vm10, 2139095040, %v2079_v15  ;;  %vm2100_vm0 = vcmp.eq.f32.partialorder %v3796_v47, 1065353216  ;;  %v3944_v18 = vsel %vm4855_vm1, %v681_v24, %v682_v4 }
  0xe7   : > { %v842_v53 = vsel %vm4855_vm1, %v826_v14, %v681_v24  ;;  %v2088_v38 = vsel %vm2085_vm9, 2143289344, %v2084_v50  ;;  %vm3952_vm11 = vcmp.eq.f32.partialorder %v2094_v56, 2139095040  ;;  %vm2111_vm3 = vcmp.ne.f32.partialorder %v3796_v47, %v3796_v47 }
  0xe8   : > { %v2146_v21 = vand.u32 2147483647, %v3937_v61  ;;  %v2089_v48 = vsel %vm2074_vm8, 1065353216, %v2088_v38  ;;  %v956_v13 = vrot.slane %v842_v53, 1  ;;  %v761_v37 = vrot.slane %v577_v60, 4 }
  0xe9   : > { %vm368_vm12 = vcmp.eq.f32.partialorder %v3891_v2, inf  ;;  %v1571_v46 = vadd.f32 %v2806_v11, %v2089_v48  ;;  %v957_v56 = vrot.slane %v3944_v18, 1  ;;  %v793_v10 = vrot.slane %v577_v60, 2  ;;  %v2807_v60 = vld [vmem:[%s2881_s13 + $0x68] sm:$0xff] }
  0xea   : > { %2714 = vlog2.f32 %v2146_v21  ;;  %v2707_v55 = vpop.eup %2706  ;;  %v1101_v62 = vrot.slane %v842_v53, 2  ;;  %v1102_v33 = vrot.slane %v3944_v18, 2  ;;  %v1246_v16 = vrot.slane %v842_v53, 3 }
  0xeb   : > { %v1247_v22 = vrot.slane %v3944_v18, 3  ;;  %v1603_v40 = vmul.f32 0.5, %v1571_v46  ;;  %v2104_v26 = vsel %vm2098_vm5, 2143289344, %v2707_v55  ;;  %v958_v28 = vsel %vm915_vm2, %v956_v13, %v957_v56 }
  0xec   : > { %v1391_v36 = vrot.slane %v842_v53, 4  ;;  %vm370_vm7 = vcmp.eq.f32.partialorder %v3891_v2, 0.0  ;;  %v2105_v57 = vsel %vm2099_vm14, 0, %v2104_v26  ;;  %v1044_v25 = vadd.f32 %v958_v28, %v842_v53  ;;  %v4024_v28 = vld [vmem:[%s2881_s13 + $0xc0] sm:$0xff] }
  0xed   : > { %v2709_v32 = vpop.eup %2708  ;;  %vm4928_vm15 = vcmask 1045504   ;;  %vm4929_vm6 = vcmask 1044480   ;;  %1636 = vst.msk [vmem:[%s3343_s16 + $0x60] sm:$0xff] %vm1623_vm4, %v1603_v40  ;;  %v2110_v59 = vsel %vm3952_vm11, 2139095040, %v2105_v57  ;;  %v1392_v42 = vrot.slane %v3944_v18, 4 }
  0xee   : > { %v1103_v1 = vsel %vm4928_vm15, %v1101_v62, %v1102_v33  ;;  %v1248_v23 = vsel %vm4929_vm6, %v1246_v16, %v1247_v22  ;;  %v2711_v29 = vpop.eup %2710  ;;  %v858_v39 = vsel %vm4855_vm1, %v682_v4, %v761_v37  ;;  %v367_v35 = vmul.f32 %v2709_v32, %v3891_v2  ;;  %vm4932_vm5 = vmmov %vm4928_vm15 }
  0xef   : > { %v2114_v7 = vsel %vm2111_vm3, 2143289344, %v2110_v59  ;;  %v1189_v44 = vadd.f32 %v1103_v1, %v1044_v25  ;;  %vm4930_vm8 = vcmask 1042432   ;;  %v374_v27 = vmul.f32 %v2711_v29, %v3902_v58  ;;  %vm4933_vm13 = vmmov %vm4929_vm6 }
  0xf0   : > { %v875_v9 = vsel %vm4930_vm8, %v858_v39, %v793_v10  ;;  %v2115_v54 = vsel %vm2100_vm0, 1065353216, %v2114_v7  ;;  %vm4931_vm9 = vcmask 1043456   ;;  %vm375_vm10 = vcmp.eq.f32.partialorder %v3902_v58, inf }
  0xf1   : > { %v1393_v43 = vsel %vm4931_vm9, %v1391_v36, %v1392_v42  ;;  %v959_v45 = vrot.slane %v875_v9, 1  ;;  %v1104_v6 = vrot.slane %v875_v9, 2  ;;  %v1572_v34 = vadd.f32 %v2807_v60, %v2115_v54  ;;  %vm4934_vm0 = vmmov %vm4931_vm9  ;;  %v4031_v36 = vld [vmem:[%s2881_s13 + $0xc8] sm:$0xff] }
  0xf2   : > { %v1334_v30 = vadd.f32 %v1248_v23, %v1189_v44  ;;  %v1249_v19 = vrot.slane %v875_v9, 3  ;;  %v2713_v51 = vpop.eup %2712  ;;  %v1394_v4 = vrot.slane %v875_v9, 4  ;;  %v371_v47 = vand.u32 2147483648, %v3891_v2 }
  0xf3   : > { %v960_v24 = vsel %vm915_vm2, %v957_v56, %v959_v45  ;;  %v1105_v49 = vsel %vm4932_vm5, %v1102_v33, %v1104_v6  ;;  %v1604_v15 = vmul.f32 0.5, %v1572_v34  ;;  %v2122_v14 = vmul.f32 0.4, %v2713_v51 }
  0xf4   : > { %v1479_v50 = vadd.f32 %v1393_v43, %v1334_v30  ;;  %v1045_v53 = vadd.f32 %v960_v24, %v3944_v18  ;;  %v369_v38 = vsel %vm368_vm12, %v3891_v2, %v367_v35  ;;  %v376_v3 = vsel %vm375_vm10, %v3902_v58, %v374_v27 }
  0xf5   : > { %vm377_vm14 = vcmp.eq.f32.partialorder %v3902_v58, 0.0  ;;  %v378_v48 = vand.u32 2147483648, %v3902_v58  ;;  %1637 = vst.msk [vmem:[%s3343_s16 + $0x68] sm:$0xff] %vm1623_vm4, %v1604_v15  ;;  %2716 = vpow2.f32 %v2122_v14  ;;  %v1250_v11 = vsel %vm4933_vm13, %v1247_v22, %v1249_v19 }
  0xf6   : > { %v4005_v13 = vmul.f32 0.04, %v1479_v50  ;;  %v1190_v37 = vadd.f32 %v1105_v49, %v1045_v53  ;;  %v202_v18 = vmul.f32 %v3891_v2, %v3891_v2  ;;  %v482_v46 = vadd.f32 %v3663_v31, %v3556_v52 }
  0xf7   : > { %v483_v56 = vadd.f32 %v3669_v12, %v3558_v63  ;;  %v2715_v10 = vpop.eup %2714  ;;  %v1395_v62 = vsel %vm4934_vm0, %v1392_v42, %v1394_v4  ;;  %v203_v33 = vmul.f32 %v3902_v58, %v3902_v58  ;;  %v372_v16 = vsel %vm370_vm7, %v371_v47, %v369_v38 }
  0xf8   : > { %v2172_v55 = vand.u32 2147483647, %v4005_v13  ;;  %v2148_v22 = vmul.f32 0.4, %v2715_v10  ;;  %v1335_v40 = vadd.f32 %v1250_v11, %v1190_v37  ;;  %v379_v26 = vsel %vm377_vm14, %v378_v48, %v376_v3 }
  0xf9   : > { %v514_v52 = vadd.f32 %v482_v46, %v3792_v8  ;;  %vm2124_vm11 = vcmp.lt.f32.partialorder %v3916_v41, 0  ;;  %v515_v63 = vadd.f32 %v483_v56, %v3827_v5  ;;  %v4033_v32 = vmul.f32 %v372_v16, %v202_v18 }
  0xfa   : > { %2718 = vlog2.f32 %v2172_v55  ;;  %v1480_v2 = vadd.f32 %v1395_v62, %v1335_v40  ;;  %vm2125_vm3 = vcmp.eq.f32.partialorder %v3916_v41, 0  ;;  %v4037_v57 = vmul.f32 %v379_v26, %v203_v33 }
  0xfb   : > { %2720 = vpow2.f32 %v2148_v22  ;;  %v546_v58 = vadd.f32 %v514_v52, %v3909_v20  ;;  %v547_v25 = vadd.f32 %v515_v63, %v3913_v0  ;;  %vm2126_vm12 = vcmp.eq.f32.partialorder %v3916_v41, 1065353216  ;;  %v2808_v63 = vld [vmem:[%s2881_s13 + $0x70] sm:$0xff] }
  0xfc   : > { %2722 = vrsqrt.f32 %v4024_v28  ;;  %vm2137_vm7 = vcmp.ne.f32.partialorder %v3916_v41, %v3916_v41  ;;  %v4044_v1 = vmul.f32 0.04, %v1480_v2  ;;  %vm4050_vm15 = vcmp.eq.f32.partialorder %v2120_v17, 2139095040 }
  0xfd   : > { %v578_v23 = vadd.f32 %v546_v58, %v4033_v32  ;;  %2724 = vrsqrt.f32 %v4031_v36  ;;  %vm2150_vm6 = vcmp.lt.f32.partialorder %v3937_v61, 0  ;;  %v579_v59 = vadd.f32 %v547_v25, %v4037_v57 }
  0xfe   : > { %v484_v42 = vadd.f32 %v3792_v8, %v3663_v31  ;;  %vm2151_vm8 = vcmp.eq.f32.partialorder %v3937_v61, 0  ;;  %v2198_v39 = vand.u32 2147483647, %v4044_v1  ;;  %v4062_v35 = vmul.f32 %v4024_v28, %v4024_v28 }
  0xff   : > { %v4066_v17 = vmul.f32 %v4031_v36, %v4031_v36  ;;  %vm4070_vm9 = vcmp.eq.f32.partialorder %v2146_v21, 2139095040  ;;  %v617_v44 = vrot.slane %v578_v23, 2  ;;  %v684_v31 = vrot.slane %v578_v23, 6 }
 0x100   : > { %v685_v9 = vrot.slane %v579_v59, 6  ;;  %v385_v27 = vand.u32 2147483648, %v4024_v28  ;;  %vm2163_vm10 = vcmp.ne.f32.partialorder %v3937_v61, %v3937_v61  ;;  %2726 = vlog2.f32 %v2198_v39 }
 0x101   : > { %v762_v54 = vrot.slane %v579_v59, 4  ;;  %v794_v43 = vrot.slane %v579_v59, 2  ;;  %v392_v45 = vand.u32 2147483648, %v4031_v36  ;;  %vm2152_vm5 = vcmp.eq.f32.partialorder %v3937_v61, 1065353216 }
 0x102   : > { %v4082_v21 = vsel %vm4855_vm1, %v684_v31, %v685_v9  ;;  %vm4939_vm14 = vcmask 1040384   ;;  %v4087_v60 = vadd.f32 %v3827_v5, %v3669_v12  ;;  %v4090_v34 = vadd.f32 %v484_v42, %v3909_v20  ;;  %v2717_v30 = vpop.eup %2716 }
 0x103   : > { %v827_v6 = vsel %vm4939_vm14, %v617_v44, %v578_v23  ;;  %v962_v51 = vrot.slane %v4082_v21, 1  ;;  %v1107_v24 = vrot.slane %v4082_v21, 2  ;;  %v1252_v49 = vrot.slane %v4082_v21, 3 }
 0x104   : > { %v843_v19 = vsel %vm4855_vm1, %v827_v6, %v684_v31  ;;  %v2130_v4 = vsel %vm2124_vm11, 2143289344, %v2717_v30  ;;  %vm384_vm0 = vcmp.eq.f32.partialorder %v4024_v28, 0.0  ;;  %v1397_v53 = vrot.slane %v4082_v21, 4 }
 0x105   : > { %v961_v47 = vrot.slane %v843_v19, 1  ;;  %v1106_v12 = vrot.slane %v843_v19, 2  ;;  %v1251_v15 = vrot.slane %v843_v19, 3  ;;  %v2131_v14 = vsel %vm2125_vm3, 0, %v2130_v4 }
 0x106   : > { %v1396_v50 = vrot.slane %v843_v19, 4  ;;  %v859_v38 = vsel %vm4855_vm1, %v685_v9, %v762_v54  ;;  %v2136_v3 = vsel %vm4050_vm15, 2139095040, %v2131_v14  ;;  %vm4940_vm11 = vcmask 1045504  }
 0x107   : > { %v963_v48 = vsel %vm915_vm2, %v961_v47, %v962_v51  ;;  %v1108_v37 = vsel %vm4940_vm11, %v1106_v12, %v1107_v24  ;;  %v1253_v11 = vsel %vm4933_vm13, %v1251_v15, %v1252_v49  ;;  %v2719_v18 = vpop.eup %2718  ;;  %v2140_v46 = vsel %vm2137_vm7, 2143289344, %v2136_v3  ;;  %v2809_v47 = vld [vmem:[%s2881_s13 + $0x78] sm:$0xff] }
 0x108   : > { %v1046_v56 = vadd.f32 %v963_v48, %v843_v19  ;;  %vm4941_vm3 = vcmask 1043456   ;;  %vm4942_vm1 = vcmask 1042432   ;;  %vm391_vm14 = vcmp.eq.f32.partialorder %v4031_v36, 0.0  ;;  %v2721_v33 = vpop.eup %2720 }
 0x109   : > { %v1398_v10 = vsel %vm4941_vm3, %v1396_v50, %v1397_v53  ;;  %v876_v62 = vsel %vm4942_vm1, %v859_v38, %v794_v43  ;;  %v2141_v16 = vsel %vm2126_vm12, 1065353216, %v2140_v46  ;;  %v2174_v22 = vmul.f32 0.4, %v2719_v18  ;;  %v2723_v52 = vpop.eup %2722  ;;  %vm4943_vm1 = vmmov %vm4940_vm11  ;;  %v4167_v18 = vld [vmem:[%s2881_s13 + $0xd0] sm:$0xff] }
 0x10a   : > { %v964_v40 = vrot.slane %v876_v62, 1  ;;  %v1109_v26 = vrot.slane %v876_v62, 2  ;;  %v1573_v2 = vadd.f32 %v2808_v63, %v2141_v16  ;;  %v2156_v58 = vsel %vm2150_vm6, 2143289344, %v2721_v33  ;;  %v2725_v29 = vpop.eup %2724  ;;  %vm4944_vm12 = vmmov %vm4933_vm13 }
 0x10b   : > { %v1191_v25 = vadd.f32 %v1108_v37, %v1046_v56  ;;  %v1254_v23 = vrot.slane %v876_v62, 3  ;;  %v2157_v59 = vsel %vm2151_vm8, 0, %v2156_v58  ;;  %2728 = vpow2.f32 %v2174_v22  ;;  %vm4945_vm7 = vmmov %vm4941_vm3 }
 0x10c   : > { %v965_v41 = vsel %vm915_vm2, %v962_v51, %v964_v40  ;;  %v1110_v42 = vsel %vm4943_vm1, %v1107_v24, %v1109_v26  ;;  %v1605_v44 = vmul.f32 0.5, %v1573_v2  ;;  %v2162_v31 = vsel %vm4070_vm9, 2139095040, %v2157_v59 }
 0x10d   : > { %v1336_v9 = vadd.f32 %v1253_v11, %v1191_v25  ;;  %v1047_v54 = vadd.f32 %v965_v41, %v4082_v21  ;;  %v2166_v43 = vsel %vm2163_vm10, 2143289344, %v2162_v31  ;;  %v1255_v6 = vsel %vm4944_vm12, %v1252_v49, %v1254_v23  ;;  %v2727_v21 = vpop.eup %2726 }
 0x10e   : > { %v1399_v30 = vrot.slane %v876_v62, 4  ;;  %v381_v19 = vmul.f32 %v2723_v52, %v4024_v28  ;;  %1638 = vst.msk [vmem:[%s3343_s16 + $0x70] sm:$0xff] %vm1623_vm4, %v1605_v44  ;;  %v2167_v51 = vsel %vm2152_vm5, 1065353216, %v2166_v43  ;;  %v388_v4 = vmul.f32 %v2725_v29, %v4031_v36  ;;  %v2810_v43 = vld [vmem:[%s2881_s13 + $0x80] sm:$0xff] }
 0x10f   : > { %v1481_v24 = vadd.f32 %v1398_v10, %v1336_v9  ;;  %v1192_v7 = vadd.f32 %v1110_v42, %v1047_v54  ;;  %v1574_v12 = vadd.f32 %v2809_v47, %v2167_v51  ;;  %vm4946_vm15 = vcmp.eq.f32.partialorder %v4024_v28, inf }
 0x110   : > { %v1400_v15 = vsel %vm4945_vm7, %v1397_v53, %v1399_v30  ;;  %v383_v49 = vsel %vm4946_vm15, %v4024_v28, %v381_v19  ;;  %v517_v14 = vadd.f32 %v4087_v60, %v3913_v0  ;;  %v2200_v61 = vmul.f32 0.4, %v2727_v21 }
 0x111   : > { %v4145_v50 = vmul.f32 0.04, %v1481_v24  ;;  %v1337_v38 = vadd.f32 %v1255_v6, %v1192_v7  ;;  %v386_v3 = vsel %vm384_vm0, %v385_v27, %v383_v49  ;;  %v1606_v48 = vmul.f32 0.5, %v1574_v12 }
 0x112   : > { %vm4947_vm6 = vcmp.eq.f32.partialorder %v4031_v36, inf  ;;  %v548_v37 = vadd.f32 %v4090_v34, %v4033_v32  ;;  %2730 = vpow2.f32 %v2200_v61  ;;  %v4164_v27 = vmul.f32 %v386_v3, %v4062_v35 }
 0x113   : > { %v390_v53 = vsel %vm4947_vm6, %v4031_v36, %v388_v4  ;;  %v2224_v60 = vand.u32 2147483647, %v4145_v50  ;;  %1639 = vst.msk [vmem:[%s3343_s16 + $0x78] sm:$0xff] %vm1623_vm4, %v1606_v48  ;;  %v1482_v11 = vadd.f32 %v1400_v15, %v1337_v38  ;;  %v549_v46 = vadd.f32 %v517_v14, %v4037_v57 }
 0x114   : > { %v393_v28 = vsel %vm391_vm14, %v392_v45, %v390_v53  ;;  %vm2176_vm8 = vcmp.lt.f32.partialorder %v4005_v13, 0  ;;  %vm2177_vm9 = vcmp.eq.f32.partialorder %v4005_v13, 0  ;;  %v580_v36 = vadd.f32 %v548_v37, %v4164_v27 }
 0x115   : > { %2732 = vlog2.f32 %v2224_v60  ;;  %v4172_v34 = vmul.f32 %v393_v28, %v4066_v17  ;;  %v4177_v56 = vmul.f32 0.04, %v1482_v11  ;;  %vm2178_vm10 = vcmp.eq.f32.partialorder %v4005_v13, 1065353216 }
 0x116   : > { %vm2189_vm5 = vcmp.ne.f32.partialorder %v4005_v13, %v4005_v13  ;;  %2734 = vrsqrt.f32 %v4167_v18  ;;  %vm4187_vm13 = vcmp.eq.f32.partialorder %v2172_v55, 2139095040  ;;  %vm2202_vm0 = vcmp.lt.f32.partialorder %v4044_v1, 0 }
 0x117   : > { %v581_v35 = vadd.f32 %v549_v46, %v4172_v34  ;;  %vm2203_vm14 = vcmp.eq.f32.partialorder %v4044_v1, 0  ;;  %v2250_v45 = vand.u32 2147483647, %v4177_v56  ;;  %vm2215_vm11 = vcmp.ne.f32.partialorder %v4044_v1, %v4044_v1 }
 0x118   : > { %v2729_v10 = vpop.eup %2728  ;;  %v618_v62 = vrot.slane %v580_v36, 2  ;;  %v687_v33 = vrot.slane %v580_v36, 6  ;;  %vm2204_vm3 = vcmp.eq.f32.partialorder %v4044_v1, 1065353216  ;;  %vm4201_vm1 = vcmp.eq.f32.partialorder %v2198_v39, 2139095040 }
 0x119   : > { %v688_v16 = vrot.slane %v581_v35, 6  ;;  %v2182_v22 = vsel %vm2176_vm8, 2143289344, %v2729_v10  ;;  %2736 = vlog2.f32 %v2250_v45  ;;  %v763_v40 = vrot.slane %v581_v35, 4  ;;  %v4240_v10 = vld [vmem:[%s2881_s13 + $0xd8] sm:$0xff] }
 0x11a   : > { %v2183_v26 = vsel %vm2177_vm9, 0, %v2182_v22  ;;  %vm4952_vm12 = vcmask 1041408   ;;  %vm4953_vm7 = vcmask 1040384   ;;  %v795_v2 = vrot.slane %v581_v35, 2  ;;  %v2811_v22 = vld [vmem:[%s2881_s13 + $0x88] sm:$0xff] }
 0x11b   : > { %v689_v52 = vsel %vm4952_vm12, %v687_v33, %v688_v16  ;;  %v828_v63 = vsel %vm4953_vm7, %v618_v62, %v580_v36  ;;  %v2188_v58 = vsel %vm4187_vm13, 2139095040, %v2183_v26  ;;  %vm4954_vm15 = vmmov %vm4952_vm12  ;;  %vm4955_vm6 = vcmask 1045504  }
 0x11c   : > { %v844_v39 = vsel %vm4954_vm15, %v828_v63, %v687_v33  ;;  %v967_v25 = vrot.slane %v689_v52, 1  ;;  %v1112_v23 = vrot.slane %v689_v52, 2  ;;  %v2192_v29 = vsel %vm2189_vm5, 2143289344, %v2188_v58  ;;  %vm4956_vm8 = vmmov %vm4952_vm12 }
 0x11d   : > { %v966_v59 = vrot.slane %v844_v39, 1  ;;  %v1111_v41 = vrot.slane %v844_v39, 2  ;;  %v1256_v42 = vrot.slane %v844_v39, 3  ;;  %v2193_v44 = vsel %vm2178_vm10, 1065353216, %v2192_v29  ;;  %vm4960_vm10 = vmmov %vm4955_vm6 }
 0x11e   : > { %v1257_v31 = vrot.slane %v689_v52, 3  ;;  %v1401_v9 = vrot.slane %v844_v39, 4  ;;  %v1402_v54 = vrot.slane %v689_v52, 4  ;;  %v1575_v6 = vadd.f32 %v2810_v43, %v2193_v44  ;;  %v4275_v43 = vld [vmem:[%s2881_s13 + $0xe8] sm:$0xff] }
 0x11f   : > { %v968_v30 = vsel %vm915_vm2, %v966_v59, %v967_v25  ;;  %v1113_v19 = vsel %vm4955_vm6, %v1111_v41, %v1112_v23  ;;  %v860_v51 = vsel %vm4956_vm8, %v688_v16, %v763_v40  ;;  %v2731_v24 = vpop.eup %2730  ;;  %vm4957_vm9 = vcmask 1044480  }
 0x120   : > { %v1048_v7 = vadd.f32 %v968_v30, %v844_v39  ;;  %v1258_v4 = vsel %vm4957_vm9, %v1256_v42, %v1257_v31  ;;  %vm4958_vm5 = vcmask 1043456   ;;  %vm4959_vm13 = vcmask 1042432   ;;  %v4263_v42 = vld [vmem:[%s2881_s13 + $0xe0] sm:$0xff] }
 0x121   : > { %v1403_v21 = vsel %vm4958_vm5, %v1401_v9, %v1402_v54  ;;  %v877_v13 = vsel %vm4959_vm13, %v860_v51, %v795_v2  ;;  %v1607_v47 = vmul.f32 0.5, %v1575_v6  ;;  %v2208_v12 = vsel %vm2202_vm0, 2143289344, %v2731_v24 }
 0x122   : > { %v969_v15 = vrot.slane %v877_v13, 1  ;;  %v1114_v49 = vrot.slane %v877_v13, 2  ;;  %v2733_v14 = vpop.eup %2732  ;;  %v2209_v61 = vsel %vm2203_vm14, 0, %v2208_v12  ;;  %v1193_v38 = vadd.f32 %v1113_v19, %v1048_v7  ;;  %vm4961_vm14 = vmmov %vm4957_vm9 }
 0x123   : > { %v1259_v3 = vrot.slane %v877_v13, 3  ;;  %v1404_v48 = vrot.slane %v877_v13, 4  ;;  %1640 = vst.msk [vmem:[%s3343_s16 + $0x80] sm:$0xff] %vm1623_vm4, %v1607_v47  ;;  %v2214_v53 = vsel %vm4201_vm1, 2139095040, %v2209_v61  ;;  %v2226_v37 = vmul.f32 0.4, %v2733_v14  ;;  %v2735_v46 = vpop.eup %2734  ;;  %vm4962_vm1 = vmmov %vm4958_vm5 }
 0x124   : > { %v970_v11 = vsel %vm915_vm2, %v967_v25, %v969_v15  ;;  %v1115_v28 = vsel %vm4960_vm10, %v1112_v23, %v1114_v49  ;;  %v2218_v36 = vsel %vm2215_vm11, 2143289344, %v2214_v53  ;;  %v1338_v35 = vadd.f32 %v1258_v4, %v1193_v38 }
 0x125   : > { %v1049_v17 = vadd.f32 %v970_v11, %v689_v52  ;;  %vm396_vm0 = vcmp.eq.f32.partialorder %v4167_v18, inf  ;;  %v2219_v62 = vsel %vm2204_vm3, 1065353216, %v2218_v36  ;;  %2738 = vpow2.f32 %v2226_v37 }
 0x126   : > { %v1260_v33 = vsel %vm4961_vm14, %v1257_v31, %v1259_v3  ;;  %v395_v16 = vmul.f32 %v2735_v46, %v4167_v18  ;;  %v1576_v55 = vadd.f32 %v2811_v22, %v2219_v62  ;;  %v1483_v40 = vadd.f32 %v1403_v21, %v1338_v35  ;;  %v2737_v52 = vpop.eup %2736  ;;  %v4354_v35 = vld [vmem:[%s2881_s13 + $0xf0] sm:$0xff] }
 0x127   : > { %v1194_v26 = vadd.f32 %v1115_v28, %v1049_v17  ;;  %vm398_vm11 = vcmp.eq.f32.partialorder %v4167_v18, 0.0  ;;  %v1405_v63 = vsel %vm4962_vm1, %v1402_v54, %v1404_v48  ;;  %v399_v1 = vand.u32 2147483648, %v4167_v18  ;;  %v2812_v17 = vld [vmem:[%s2881_s13 + $0x90] sm:$0xff] }
 0x128   : > { %v397_v2 = vsel %vm396_vm0, %v4167_v18, %v395_v16  ;;  %2740 = vrsqrt.f32 %v4240_v10  ;;  %v1608_v58 = vmul.f32 0.5, %v1576_v55  ;;  %v2252_v39 = vmul.f32 0.4, %v2737_v52 }
 0x129   : > { %v4253_v25 = vmul.f32 0.04, %v1483_v40  ;;  %v1339_v23 = vadd.f32 %v1260_v33, %v1194_v26  ;;  %v486_v29 = vadd.f32 %v3909_v20, %v3792_v8  ;;  %v206_v41 = vmul.f32 %v4167_v18, %v4167_v18 }
 0x12a   : > { %1641 = vst.msk [vmem:[%s3343_s16 + $0x88] sm:$0xff] %vm1623_vm4, %v1608_v58  ;;  %2742 = vpow2.f32 %v2252_v39  ;;  %v400_v31 = vsel %vm398_vm11, %v399_v1, %v397_v2  ;;  %v487_v8 = vadd.f32 %v3913_v0, %v3827_v5  ;;  %vm2228_vm3 = vcmp.lt.f32.partialorder %v4145_v50, 0 }
 0x12b   : > { %v2276_v59 = vand.u32 2147483647, %v4253_v25  ;;  %v1484_v44 = vadd.f32 %v1405_v63, %v1339_v23  ;;  %v518_v9 = vadd.f32 %v486_v29, %v4033_v32  ;;  %vm2229_vm12 = vcmp.eq.f32.partialorder %v4145_v50, 0 }
 0x12c   : > { %v4280_v18 = vmul.f32 %v400_v31, %v206_v41  ;;  %vm2230_vm7 = vcmp.eq.f32.partialorder %v4145_v50, 1065353216  ;;  %vm4286_vm15 = vcmp.eq.f32.partialorder %v2224_v60, 2139095040  ;;  %vm2241_vm6 = vcmp.ne.f32.partialorder %v4145_v50, %v4145_v50 }
 0x12d   : > { %2744 = vlog2.f32 %v2276_v59  ;;  %v4272_v54 = vmul.f32 0.04, %v1484_v44  ;;  %v550_v6 = vadd.f32 %v518_v9, %v4164_v27  ;;  %v207_v19 = vmul.f32 %v4240_v10, %v4240_v10  ;;  %v2813_v9 = vld [vmem:[%s2881_s13 + $0x98] sm:$0xff] }
 0x12e   : > { %2746 = vrsqrt.f32 %v4263_v42  ;;  %v519_v51 = vadd.f32 %v487_v8, %v4037_v57  ;;  %vm2254_vm8 = vcmp.lt.f32.partialorder %v4177_v56, 0  ;;  %vm2255_vm9 = vcmp.eq.f32.partialorder %v4177_v56, 0 }
 0x12f   : > { %v2302_v30 = vand.u32 2147483647, %v4272_v54  ;;  %v4297_v24 = vadd.f32 %v550_v6, %v4280_v18  ;;  %2748 = vrsqrt.f32 %v4275_v43  ;;  %vm2256_vm5 = vcmp.eq.f32.partialorder %v4177_v56, 1065353216 }
 0x130   : > { %vm4307_vm13 = vcmp.eq.f32.partialorder %v2250_v45, 2139095040  ;;  %vm2267_vm10 = vcmp.ne.f32.partialorder %v4177_v56, %v4177_v56  ;;  %vm403_vm0 = vcmp.eq.f32.partialorder %v4240_v10, inf  ;;  %vm405_vm14 = vcmp.eq.f32.partialorder %v4240_v10, 0.0 }
 0x131   : > { %2750 = vlog2.f32 %v2302_v30  ;;  %v619_v4 = vrot.slane %v4297_v24, 2  ;;  %v406_v13 = vand.u32 2147483648, %v4240_v10  ;;  %v4321_v45 = vmul.f32 %v4263_v42, %v4263_v42 }
 0x132   : > { %v2739_v60 = vpop.eup %2738  ;;  %v551_v15 = vadd.f32 %v519_v51, %v4172_v34  ;;  %v4328_v49 = vmul.f32 %v4275_v43, %v4275_v43  ;;  %vm410_vm11 = vcmp.eq.f32.partialorder %v4263_v42, inf  ;;  %v690_v38 = vrot.slane %v4297_v24, 6 }
 0x133   : > { %v2234_v21 = vsel %vm2228_vm3, 2143289344, %v2739_v60  ;;  %v488_v3 = vadd.f32 %v4033_v32, %v3909_v20  ;;  %vm4967_vm1 = vcmask 1040384   ;;  %vm412_vm3 = vcmp.eq.f32.partialorder %v4263_v42, 0.0 }
 0x134   : > { %v2235_v12 = vsel %vm2229_vm12, 0, %v2234_v21  ;;  %v829_v53 = vsel %vm4967_vm1, %v619_v4, %v4297_v24  ;;  %v413_v37 = vand.u32 2147483648, %v4263_v42  ;;  %vm417_vm12 = vcmp.eq.f32.partialorder %v4275_v43, inf  ;;  %v4391_v24 = vld [vmem:[%s2881_s13 + $0xf8] sm:$0xff] }
 0x135   : > { %v2741_v47 = vpop.eup %2740  ;;  %v2240_v14 = vsel %vm4286_vm15, 2139095040, %v2235_v12  ;;  %v420_v46 = vand.u32 2147483648, %v4275_v43  ;;  %v489_v36 = vadd.f32 %v4037_v57, %v3913_v0  ;;  %v4363_v16 = vmul.f32 %v4354_v35, %v4354_v35 }
 0x136   : > { %v402_v61 = vmul.f32 %v2741_v47, %v4240_v10  ;;  %v2244_v48 = vsel %vm2241_vm6, 2143289344, %v2240_v14  ;;  %vm419_vm15 = vcmp.eq.f32.partialorder %v4275_v43, 0.0  ;;  %v520_v26 = vadd.f32 %v488_v3, %v4164_v27 }
 0x137   : > { %v2743_v11 = vpop.eup %2742  ;;  %v2245_v28 = vsel %vm2230_vm7, 1065353216, %v2244_v48  ;;  %vm4968_vm7 = vcmask 1041408   ;;  %2752 = vrsqrt.f32 %v4354_v35  ;;  %v521_v29 = vadd.f32 %v489_v36, %v4172_v34 }
 0x138   : > { %v404_v20 = vsel %vm403_vm0, %v4240_v10, %v402_v61  ;;  %v1577_v62 = vadd.f32 %v2812_v17, %v2245_v28  ;;  %v2260_v33 = vsel %vm2254_vm8, 2143289344, %v2743_v11  ;;  %v4370_v40 = vsel %vm4968_vm7, %v829_v53, %v690_v38  ;;  %vm4969_vm8 = vmmov %vm4968_vm7 }
 0x139   : > { %v407_v50 = vsel %vm405_vm14, %v406_v13, %v404_v20  ;;  %v2261_v55 = vsel %vm2255_vm9, 0, %v2260_v33  ;;  %v971_v44 = vrot.slane %v4370_v40, 1  ;;  %v1116_v31 = vrot.slane %v4370_v40, 2  ;;  %vm4970_vm9 = vmmov %vm4968_vm7 }
 0x13a   : > { %v2745_v22 = vpop.eup %2744  ;;  %v4367_v0 = vmul.f32 %v407_v50, %v207_v19  ;;  %v1609_v63 = vmul.f32 0.5, %v1577_v62  ;;  %v2266_v2 = vsel %vm4307_vm13, 2139095040, %v2261_v55  ;;  %v1261_v7 = vrot.slane %v4370_v40, 3 }
 0x13b   : > { %v2747_v52 = vpop.eup %2746  ;;  %v2278_v1 = vmul.f32 0.4, %v2745_v22  ;;  %v2270_v58 = vsel %vm2267_vm10, 2143289344, %v2266_v2  ;;  %v1406_v56 = vrot.slane %v4370_v40, 4  ;;  %vm2280_vm6 = vcmp.lt.f32.partialorder %v4253_v25, 0 }
 0x13c   : > { %v583_v39 = vadd.f32 %v551_v15, %v4367_v0  ;;  %v409_v23 = vmul.f32 %v2747_v52, %v4263_v42  ;;  %1642 = vst.msk [vmem:[%s3343_s16 + $0x90] sm:$0xff] %vm1623_vm4, %v1609_v63  ;;  %v2271_v41 = vsel %vm2256_vm5, 1065353216, %v2270_v58  ;;  %v2749_v8 = vpop.eup %2748  ;;  %vm2281_vm5 = vcmp.eq.f32.partialorder %v4253_v25, 0 }
 0x13d   : > { %2754 = vpow2.f32 %v2278_v1  ;;  %v1578_v6 = vadd.f32 %v2813_v9, %v2271_v41  ;;  %v416_v21 = vmul.f32 %v2749_v8, %v4275_v43  ;;  %vm4408_vm13 = vcmp.eq.f32.partialorder %v2276_v59, 2139095040 }
 0x13e   : > { %v691_v5 = vrot.slane %v583_v39, 6  ;;  %v764_v19 = vrot.slane %v583_v39, 4  ;;  %v796_v51 = vrot.slane %v583_v39, 2  ;;  %v2751_v60 = vpop.eup %2750  ;;  %v411_v4 = vsel %vm410_vm11, %v4263_v42, %v409_v23 }
 0x13f   : > { %v1610_v13 = vmul.f32 0.5, %v1578_v6  ;;  %v2304_v47 = vmul.f32 0.4, %v2751_v60  ;;  %2756 = vrsqrt.f32 %v4391_v24  ;;  %vm4973_vm10 = vcmask 1042432  }
 0x140   : > { %v692_v12 = vsel %vm4969_vm8, %v690_v38, %v691_v5  ;;  %v861_v15 = vsel %vm4970_vm9, %v691_v5, %v764_v19  ;;  %v414_v53 = vsel %vm412_vm3, %v413_v37, %v411_v4  ;;  %v418_v11 = vsel %vm417_vm12, %v4275_v43, %v416_v21 }
 0x141   : > { %v972_v14 = vrot.slane %v692_v12, 1  ;;  %v1117_v61 = vrot.slane %v692_v12, 2  ;;  %v1262_v3 = vrot.slane %v692_v12, 3  ;;  %1643 = vst.msk [vmem:[%s3343_s16 + $0x98] sm:$0xff] %vm1623_vm4, %v1610_v13  ;;  %2758 = vpow2.f32 %v2304_v47 }
 0x142   : > { %v878_v38 = vsel %vm4973_vm10, %v861_v15, %v796_v51  ;;  %vm2293_vm0 = vcmp.ne.f32.partialorder %v4253_v25, %v4253_v25  ;;  %vm4974_vm14 = vcmask 1045504   ;;  %v1407_v20 = vrot.slane %v692_v12, 4 }
 0x143   : > { %v973_v28 = vsel %vm915_vm2, %v971_v44, %v972_v14  ;;  %v1118_v59 = vsel %vm4974_vm14, %v1116_v31, %v1117_v61  ;;  %v552_v36 = vadd.f32 %v520_v26, %v4280_v18  ;;  %vm2282_vm11 = vcmp.eq.f32.partialorder %v4253_v25, 1065353216  ;;  %vm4976_vm7 = vmmov %vm4974_vm14 }
 0x144   : > { %v1050_v17 = vadd.f32 %v973_v28, %v4370_v40  ;;  %v974_v62 = vrot.slane %v878_v38, 1  ;;  %v1119_v37 = vrot.slane %v878_v38, 2  ;;  %v1264_v33 = vrot.slane %v878_v38, 3  ;;  %v2753_v23 = vpop.eup %2752 }
 0x145   : > { %vm2306_vm1 = vcmp.lt.f32.partialorder %v4272_v54, 0  ;;  %vm4975_vm3 = vcmask 1044480   ;;  %v421_v22 = vsel %vm419_vm15, %v420_v46, %v418_v11  ;;  %v4432_v55 = vmul.f32 %v414_v53, %v4321_v45 }
 0x146   : > { %v1263_v50 = vsel %vm4975_vm3, %v1261_v7, %v1262_v3  ;;  %v553_v26 = vadd.f32 %v521_v29, %v4367_v0  ;;  %vm2307_vm12 = vcmp.eq.f32.partialorder %v4272_v54, 0  ;;  %v1195_v40 = vadd.f32 %v1118_v59, %v1050_v17  ;;  %vm4980_vm10 = vmmov %vm4975_vm3 }
 0x147   : > { %v975_v52 = vsel %vm915_vm2, %v972_v14, %v974_v62  ;;  %v1120_v63 = vsel %vm4976_vm7, %v1117_v61, %v1119_v37  ;;  %v1409_v2 = vrot.slane %v878_v38, 4  ;;  %vm4440_vm8 = vcmp.eq.f32.partialorder %v2302_v30, 2139095040 }
 0x148   : > { %vm4979_vm15 = vcmask 1043456   ;;  %v1051_v45 = vadd.f32 %v975_v52, %v692_v12  ;;  %v4446_v58 = vmul.f32 %v421_v22, %v4328_v49  ;;  %v584_v39 = vadd.f32 %v552_v36, %v4432_v55 }
 0x149   : > { %v1408_v46 = vsel %vm4979_vm15, %v1406_v56, %v1407_v20  ;;  %vm2319_vm9 = vcmp.ne.f32.partialorder %v4272_v54, %v4272_v54  ;;  %v1340_v29 = vadd.f32 %v1263_v50, %v1195_v40  ;;  %v1265_v41 = vsel %vm4980_vm10, %v1262_v3, %v1264_v33 }
 0x14a   : > { %v4454_v30 = vmul.f32 %v4391_v24, %v4391_v24  ;;  %vm424_vm14 = vcmp.eq.f32.partialorder %v4354_v35, inf  ;;  %vm2308_vm3 = vcmp.eq.f32.partialorder %v4272_v54, 1065353216  ;;  %v1196_v44 = vadd.f32 %v1120_v63, %v1051_v45  ;;  %v2755_v8 = vpop.eup %2754 }
 0x14b   : > { %v4459_v49 = vadd.f32 %v553_v26, %v4446_v58  ;;  %v620_v31 = vrot.slane %v584_v39, 2  ;;  %vm426_vm7 = vcmp.eq.f32.partialorder %v4354_v35, 0.0  ;;  %v1485_v9 = vadd.f32 %v1408_v46, %v1340_v29 }
 0x14c   : > { %v1410_v6 = vsel %vm4979_vm15, %v1407_v20, %v1409_v2  ;;  %v693_v5 = vrot.slane %v584_v39, 6  ;;  %v427_v19 = vand.u32 2147483648, %v4354_v35  ;;  %v2286_v51 = vsel %vm2280_vm6, 2143289344, %v2755_v8  ;;  %v2757_v14 = vpop.eup %2756  ;;  %v2814_v20 = vld [vmem:[%s2881_s13 + $0xa0] sm:$0xff] }
 0x14d   : > { %v1341_v60 = vadd.f32 %v1265_v41, %v1196_v44  ;;  %vm4981_vm10 = vcmask 1040384   ;;  %v423_v56 = vmul.f32 %v2753_v23, %v4354_v35  ;;  %v2287_v4 = vsel %vm2281_vm5, 0, %v2286_v51  ;;  %v2815_v23 = vld [vmem:[%s2881_s13 + $0xa8] sm:$0xff] }
 0x14e   : > { %v830_v7 = vsel %vm4981_vm10, %v620_v31, %v584_v39  ;;  %v4470_v21 = vmul.f32 0.04, %v1485_v9  ;;  %v694_v13 = vrot.slane %v4459_v49, 6  ;;  %vm431_vm15 = vcmp.eq.f32.partialorder %v4391_v24, inf  ;;  %v2759_v11 = vpop.eup %2758 }
 0x14f   : > { %v2292_v47 = vsel %vm4408_vm13, 2139095040, %v2287_v4  ;;  %v1486_v12 = vadd.f32 %v1410_v6, %v1341_v60  ;;  %vm433_vm6 = vcmp.eq.f32.partialorder %v4391_v24, 0.0  ;;  %v490_v15 = vadd.f32 %v4164_v27, %v4033_v32 }
 0x150   : > { %v2296_v61 = vsel %vm2293_vm0, 2143289344, %v2292_v47  ;;  %v2328_v3 = vand.u32 2147483647, %v4470_v21  ;;  %vm4982_vm5 = vcmask 1041408   ;;  %v434_v53 = vand.u32 2147483648, %v4391_v24 }
 0x151   : > { %v846_v38 = vsel %vm4982_vm5, %v830_v7, %v693_v5  ;;  %v2297_v48 = vsel %vm2282_vm11, 1065353216, %v2296_v61  ;;  %v4487_v28 = vmul.f32 0.04, %v1486_v12  ;;  %v425_v32 = vsel %vm424_vm14, %v4354_v35, %v423_v56  ;;  %vm4983_vm13 = vmmov %vm4982_vm5 }
 0x152   : > { %v491_v59 = vadd.f32 %v4172_v34, %v4037_v57  ;;  %v1579_v36 = vadd.f32 %v2814_v20, %v2297_v48  ;;  %v2312_v17 = vsel %vm2306_vm1, 2143289344, %v2759_v11  ;;  %2760 = vlog2.f32 %v2328_v3  ;;  %vm4986_vm1 = vmmov %vm4982_vm5 }
 0x153   : > { %v4500_v25 = vsel %vm4983_vm13, %v693_v5, %v694_v13  ;;  %v2313_v62 = vsel %vm2307_vm12, 0, %v2312_v17  ;;  %v2354_v37 = vand.u32 2147483647, %v4487_v28  ;;  %v976_v33 = vrot.slane %v846_v38, 1  ;;  %vm4994_vm5 = vmmov %vm4986_vm1 }
 0x154   : > { %v522_v57 = vadd.f32 %v490_v15, %v4280_v18  ;;  %v1611_v50 = vmul.f32 0.5, %v1579_v36  ;;  %v2318_v22 = vsel %vm4440_vm8, 2139095040, %v2313_v62  ;;  %v428_v26 = vsel %vm426_vm7, %v427_v19, %v425_v32  ;;  %vm4992_vm7 = vmmov %vm4981_vm10 }
 0x155   : > { %v430_v40 = vmul.f32 %v2757_v14, %v4391_v24  ;;  %v2322_v52 = vsel %vm2319_vm9, 2143289344, %v2318_v22  ;;  %2762 = vlog2.f32 %v2354_v37  ;;  %v977_v63 = vrot.slane %v4500_v25, 1 }
 0x156   : > { %v765_v2 = vrot.slane %v4459_v49, 4  ;;  %1644 = vst.msk [vmem:[%s3343_s16 + $0xa0] sm:$0xff] %vm1623_vm4, %v1611_v50  ;;  %v2323_v1 = vsel %vm2308_vm3, 1065353216, %v2322_v52  ;;  %v1121_v46 = vrot.slane %v846_v38, 2  ;;  %v1122_v45 = vrot.slane %v4500_v25, 2 }
 0x157   : > { %v1266_v39 = vrot.slane %v846_v38, 3  ;;  %v1580_v29 = vadd.f32 %v2815_v23, %v2323_v1  ;;  %v978_v41 = vsel %vm915_vm2, %v976_v33, %v977_v63  ;;  %v1267_v44 = vrot.slane %v4500_v25, 3 }
 0x158   : > { %v1411_v31 = vrot.slane %v846_v38, 4  ;;  %v1052_v8 = vadd.f32 %v978_v41, %v846_v38  ;;  %vm4984_vm0 = vcmask 1045504   ;;  %v1412_v6 = vrot.slane %v4500_v25, 4 }
 0x159   : > { %v1123_v9 = vsel %vm4984_vm0, %v1121_v46, %v1122_v45  ;;  %v797_v54 = vrot.slane %v4459_v49, 2  ;;  %v1612_v5 = vmul.f32 0.5, %v1580_v29  ;;  %vm4985_vm11 = vcmask 1044480   ;;  %vm4989_vm9 = vmmov %vm4984_vm0 }
 0x15a   : > { %v1268_v19 = vsel %vm4985_vm11, %v1266_v39, %v1267_v44  ;;  %v862_v51 = vsel %vm4986_vm1, %v694_v13, %v765_v2  ;;  %v432_v60 = vsel %vm431_vm15, %v4391_v24, %v430_v40  ;;  %v1197_v7 = vadd.f32 %v1123_v9, %v1052_v8  ;;  %vm4990_vm14 = vmmov %vm4985_vm11 }
 0x15b   : > { %vm4987_vm12 = vcmask 1042432   ;;  %v435_v4 = vsel %vm433_vm6, %v434_v53, %v432_v60  ;;  %v523_v47 = vadd.f32 %v491_v59, %v4367_v0  ;;  %1645 = vst.msk [vmem:[%s3343_s16 + $0xa8] sm:$0xff] %vm1623_vm4, %v1612_v5  ;;  %vm4988_vm8 = vcmask 1043456   ;;  %vm4993_vm15 = vmmov %vm4986_vm1 }
 0x15c   : > { %v879_v56 = vsel %vm4987_vm12, %v862_v51, %v797_v54  ;;  %v1413_v49 = vsel %vm4988_vm8, %v1411_v31, %v1412_v6  ;;  %v1342_v13 = vadd.f32 %v1268_v19, %v1197_v7  ;;  %v4542_v61 = vmul.f32 %v428_v26, %v4363_v16  ;;  %vm4991_vm3 = vmmov %vm4988_vm8 }
 0x15d   : > { %v979_v12 = vrot.slane %v879_v56, 1  ;;  %v1124_v15 = vrot.slane %v879_v56, 2  ;;  %v1269_v14 = vrot.slane %v879_v56, 3  ;;  %v554_v38 = vadd.f32 %v522_v57, %v4432_v55  ;;  %vm4997_vm12 = vmmov %vm4994_vm5 }
 0x15e   : > { %v1414_v53 = vrot.slane %v879_v56, 4  ;;  %v4548_v32 = vmul.f32 %v435_v4, %v4454_v30  ;;  %v1487_v59 = vadd.f32 %v1413_v49, %v1342_v13  ;;  %v555_v36 = vadd.f32 %v523_v47, %v4446_v58  ;;  %vm4998_vm8 = vmmov %vm4989_vm9 }
 0x15f   : > { %v980_v11 = vsel %vm915_vm2, %v977_v63, %v979_v12  ;;  %v1125_v48 = vsel %vm4989_vm9, %v1122_v45, %v1124_v15  ;;  %v586_v17 = vadd.f32 %v554_v38, %v4542_v61  ;;  %v2761_v62 = vpop.eup %2760  ;;  %v1270_v16 = vsel %vm4990_vm14, %v1267_v44, %v1269_v14 }
 0x160   : > { %v1053_v20 = vadd.f32 %v980_v11, %v4500_v25  ;;  %v2330_v33 = vmul.f32 0.4, %v2761_v62  ;;  %v4554_v57 = vmul.f32 0.04, %v1487_v59  ;;  %v587_v22 = vadd.f32 %v555_v36, %v4548_v32 }
 0x161   : > { %v621_v26 = vrot.slane %v586_v17, 2  ;;  %v696_v40 = vrot.slane %v586_v17, 6  ;;  %v1415_v25 = vsel %vm4991_vm3, %v1412_v6, %v1414_v53  ;;  %v492_v1 = vadd.f32 %v4280_v18, %v4164_v27 }
 0x162   : > { %v1198_v50 = vadd.f32 %v1125_v48, %v1053_v20  ;;  %v2763_v30 = vpop.eup %2762  ;;  %2764 = vpow2.f32 %v2330_v33  ;;  %v2380_v52 = vand.u32 2147483647, %v4554_v57  ;;  %v697_v46 = vrot.slane %v587_v22, 6 }
 0x163   : > { %v2356_v63 = vmul.f32 0.4, %v2763_v30  ;;  %v831_v45 = vsel %vm4992_vm7, %v621_v26, %v586_v17  ;;  %v493_v39 = vadd.f32 %v4367_v0, %v4172_v34  ;;  %vm2332_vm10 = vcmp.lt.f32.partialorder %v4470_v21, 0 }
 0x164   : > { %v1343_v2 = vadd.f32 %v1270_v16, %v1198_v50  ;;  %2766 = vlog2.f32 %v2380_v52  ;;  %v847_v29 = vsel %vm4993_vm15, %v831_v45, %v696_v40  ;;  %v766_v41 = vrot.slane %v587_v22, 4 }
 0x165   : > { %2768 = vpow2.f32 %v2356_v63  ;;  %vm2333_vm6 = vcmp.eq.f32.partialorder %v4470_v21, 0  ;;  %v698_v27 = vsel %vm4994_vm5, %v696_v40, %v697_v46  ;;  %v981_v44 = vrot.slane %v847_v29, 1 }
 0x166   : > { %v1488_v23 = vadd.f32 %v1415_v25, %v1343_v2  ;;  %v1126_v31 = vrot.slane %v847_v29, 2  ;;  %v982_v9 = vrot.slane %v698_v27, 1  ;;  %v1127_v6 = vrot.slane %v698_v27, 2 }
 0x167   : > { %v524_v54 = vadd.f32 %v492_v1, %v4432_v55  ;;  %vm2345_vm13 = vcmp.ne.f32.partialorder %v4470_v21, %v4470_v21  ;;  %v1271_v34 = vrot.slane %v847_v29, 3  ;;  %v1272_v5 = vrot.slane %v698_v27, 3 }
 0x168   : > { %v4570_v8 = vmul.f32 0.04, %v1488_v23  ;;  %v798_v19 = vrot.slane %v587_v22, 2  ;;  %v525_v51 = vadd.f32 %v493_v39, %v4446_v58  ;;  %vm2334_vm0 = vcmp.eq.f32.partialorder %v4470_v21, 1065353216 }
 0x169   : > { %vm4579_vm11 = vcmp.eq.f32.partialorder %v2328_v3, 2139095040  ;;  %vm2358_vm1 = vcmp.lt.f32.partialorder %v4487_v28, 0  ;;  %v863_v56 = vsel %vm4997_vm12, %v697_v46, %v766_v41  ;;  %v983_v4 = vsel %vm915_vm2, %v981_v44, %v982_v9 }
 0x16a   : > { %v2406_v7 = vand.u32 2147483647, %v4570_v8  ;;  %v1128_v47 = vsel %vm4998_vm8, %v1126_v31, %v1127_v6  ;;  %v1416_v49 = vrot.slane %v847_v29, 4  ;;  %v1417_v12 = vrot.slane %v698_v27, 4 }
 0x16b   : > { %vm2359_vm9 = vcmp.eq.f32.partialorder %v4487_v28, 0  ;;  %vm2371_vm14 = vcmp.ne.f32.partialorder %v4487_v28, %v4487_v28  ;;  %v1054_v3 = vadd.f32 %v983_v4, %v847_v29  ;;  %vm2360_vm3 = vcmp.eq.f32.partialorder %v4487_v28, 1065353216 }
 0x16c   : > { %2770 = vlog2.f32 %v2406_v7  ;;  %vm4999_vm7 = vcmask 1044480   ;;  %vm5000_vm15 = vcmask 1042432   ;;  %v556_v13 = vadd.f32 %v524_v54, %v4542_v61 }
 0x16d   : > { %v1273_v15 = vsel %vm4999_vm7, %v1271_v34, %v1272_v5  ;;  %v880_v14 = vsel %vm5000_vm15, %v863_v56, %v798_v19  ;;  %v557_v38 = vadd.f32 %v525_v51, %v4548_v32  ;;  %v1199_v11 = vadd.f32 %v1128_v47, %v1054_v3  ;;  %v2816_v19 = vld [vmem:[%s2881_s13 + $0xb0] sm:$0xff] }
 0x16e   : > { %v984_v48 = vrot.slane %v880_v14, 1  ;;  %v1129_v53 = vrot.slane %v880_v14, 2  ;;  %v1274_v59 = vrot.slane %v880_v14, 3  ;;  %vm5001_vm5 = vcmask 1043456  }
 0x16f   : > { %v1418_v20 = vsel %vm5001_vm5, %v1416_v49, %v1417_v12  ;;  %v1419_v36 = vrot.slane %v880_v14, 4  ;;  %v588_v17 = vadd.f32 %v556_v13, %v4432_v55  ;;  %v4601_v62 = vadd.f32 %v557_v38, %v4446_v58  ;;  %v2765_v16 = vpop.eup %2764  ;;  %v2817_v14 = vld [vmem:[%s2881_s13 + $0xb8] sm:$0xff] }
 0x170   : > { %vm4605_vm12 = vcmp.eq.f32.partialorder %v2354_v37, 2139095040  ;;  %v1344_v50 = vadd.f32 %v1273_v15, %v1199_v11  ;;  %v985_v22 = vsel %vm915_vm2, %v982_v9, %v984_v48  ;;  %v1130_v26 = vsel %vm4998_vm8, %v1127_v6, %v1129_v53 }
 0x171   : > { %v2338_v40 = vsel %vm2332_vm10, 2143289344, %v2765_v16  ;;  %v1055_v30 = vadd.f32 %v985_v22, %v698_v27  ;;  %v1275_v25 = vsel %vm4999_vm7, %v1272_v5, %v1274_v59  ;;  %v622_v63 = vrot.slane %v588_v17, 2  ;;  %v2767_v2 = vpop.eup %2766  ;;  %vm5004_vm10 = vmmov %vm5001_vm5 }
 0x172   : > { %v2339_v1 = vsel %vm2333_vm6, 0, %v2338_v40  ;;  %v1489_v37 = vadd.f32 %v1418_v20, %v1344_v50  ;;  %v699_v46 = vrot.slane %v588_v17, 6  ;;  %v700_v45 = vrot.slane %v4601_v62, 6  ;;  %v2769_v39 = vpop.eup %2768 }
 0x173   : > { %v2344_v23 = vsel %vm4579_vm11, 2139095040, %v2339_v1  ;;  %v2382_v29 = vmul.f32 0.4, %v2767_v2  ;;  %v1200_v41 = vadd.f32 %v1130_v26, %v1055_v30  ;;  %v1420_v27 = vsel %vm5004_vm10, %v1417_v12, %v1419_v36  ;;  %vm5008_vm11 = vmmov %vm4998_vm8 }
 0x174   : > { %v2348_v44 = vsel %vm2345_vm13, 2143289344, %v2344_v23  ;;  %v2364_v31 = vsel %vm2358_vm1, 2143289344, %v2769_v39  ;;  %v4625_v9 = vmul.f32 0.04, %v1489_v37  ;;  %vm5005_vm6 = vcmask 1040384   ;;  %v2819_v23 = vld [vmem:[%s2881_s13 + $0xc8] sm:$0xff] }
 0x175   : > { %v832_v6 = vsel %vm5005_vm6, %v622_v63, %v588_v17  ;;  %v2349_v54 = vsel %vm2334_vm0, 1065353216, %v2348_v44  ;;  %v2365_v34 = vsel %vm2359_vm9, 0, %v2364_v31  ;;  %2772 = vpow2.f32 %v2382_v29 }
 0x176   : > { %v1345_v5 = vadd.f32 %v1275_v25, %v1200_v41  ;;  %v1581_v51 = vadd.f32 %v2816_v19, %v2349_v54  ;;  %v2370_v60 = vsel %vm4605_vm12, 2139095040, %v2365_v34  ;;  %v2432_v56 = vand.u32 2147483647, %v4625_v9  ;;  %vm5012_vm12 = vmmov %vm5004_vm10 }
 0x177   : > { %vm5006_vm13 = vcmask 1041408   ;;  %v2374_v21 = vsel %vm2371_vm14, 2143289344, %v2370_v60  ;;  %v494_v47 = vadd.f32 %v4432_v55, %v4280_v18  ;;  %v495_v3 = vadd.f32 %v4446_v58, %v4367_v0  ;;  %vm5009_vm14 = vmmov %vm4999_vm7 }
 0x178   : > { %v4639_v4 = vsel %vm5006_vm13, %v699_v46, %v700_v45  ;;  %v1613_v49 = vmul.f32 0.5, %v1581_v51  ;;  %v2375_v12 = vsel %vm2360_vm3, 1065353216, %v2374_v21  ;;  %2774 = vlog2.f32 %v2432_v56  ;;  %vm5007_vm0 = vmmov %vm5006_vm13 }
 0x179   : > { %v2771_v15 = vpop.eup %2770  ;;  %v1582_v13 = vadd.f32 %v2817_v14, %v2375_v12  ;;  %v1490_v38 = vadd.f32 %v1420_v27, %v1345_v5  ;;  %v848_v11 = vsel %vm5007_vm0, %v832_v6, %v699_v46  ;;  %v987_v48 = vrot.slane %v4639_v4, 1  ;;  %vm5013_vm8 = vmmov %vm5007_vm0 }
 0x17a   : > { %1646 = vst.msk [vmem:[%s3343_s16 + $0xb0] sm:$0xff] %vm1623_vm4, %v1613_v49  ;;  %v2408_v53 = vmul.f32 0.4, %v2771_v15  ;;  %v986_v28 = vrot.slane %v848_v11, 1  ;;  %v1131_v59 = vrot.slane %v848_v11, 2  ;;  %v1132_v20 = vrot.slane %v4639_v4, 2  ;;  %vm5015_vm13 = vmmov %vm5008_vm11 }
 0x17b   : > { %v1614_v36 = vmul.f32 0.5, %v1582_v13  ;;  %v4658_v17 = vmul.f32 0.04, %v1490_v38  ;;  %v1276_v16 = vrot.slane %v848_v11, 3  ;;  %v1277_v33 = vrot.slane %v4639_v4, 3  ;;  %v2818_v13 = vld [vmem:[%s2881_s13 + $0xc0] sm:$0xff]  ;;  %vm5016_vm0 = vmmov %vm5009_vm14 }
 0x17c   : > { %2776 = vpow2.f32 %v2408_v53  ;;  %v988_v50 = vsel %vm915_vm2, %v986_v28, %v987_v48  ;;  %v526_v22 = vadd.f32 %v494_v47, %v4542_v61  ;;  %v527_v26 = vadd.f32 %v495_v3, %v4548_v32 }
 0x17d   : > { %1647 = vst.msk [vmem:[%s3343_s16 + $0xb8] sm:$0xff] %vm1623_vm4, %v1614_v36  ;;  %v2458_v40 = vand.u32 2147483647, %v4658_v17  ;;  %v1133_v30 = vsel %vm5008_vm11, %v1131_v59, %v1132_v20  ;;  %v1421_v25 = vrot.slane %v848_v11, 4  ;;  %vm2384_vm1 = vcmp.lt.f32.partialorder %v4554_v57, 0 }
 0x17e   : > { %vm2385_vm9 = vcmp.eq.f32.partialorder %v4554_v57, 0  ;;  %v1056_v63 = vadd.f32 %v988_v50, %v848_v11  ;;  %v1422_v2 = vrot.slane %v4639_v4, 4  ;;  %v1278_v61 = vsel %vm5009_vm14, %v1276_v16, %v1277_v33  ;;  %vm5019_vm14 = vmmov %vm5012_vm12 }
 0x17f   : > { %2778 = vlog2.f32 %v2458_v40  ;;  %v767_v32 = vrot.slane %v4601_v62, 4  ;;  %v799_v1 = vrot.slane %v4601_v62, 2  ;;  %vm2386_vm3 = vcmp.eq.f32.partialorder %v4554_v57, 1065353216 }
 0x180   : > { %v1201_v37 = vadd.f32 %v1133_v30, %v1056_v63  ;;  %v558_v46 = vadd.f32 %v526_v22, %v4432_v55  ;;  %v559_v39 = vadd.f32 %v527_v26, %v4446_v58  ;;  %vm4681_vm15 = vcmp.eq.f32.partialorder %v2380_v52, 2139095040 }
 0x181   : > { %vm2397_vm5 = vcmp.ne.f32.partialorder %v4554_v57, %v4554_v57  ;;  %v1423_v29 = vsel %vm5012_vm12, %v1421_v25, %v1422_v2  ;;  %v864_v41 = vsel %vm5013_vm8, %v700_v45, %v767_v32  ;;  %vm2410_vm7 = vcmp.lt.f32.partialorder %v4570_v8, 0  ;;  %vm5023_vm12 = vmmov %vm5015_vm13 }
 0x182   : > { %v2773_v27 = vpop.eup %2772  ;;  %v1346_v55 = vadd.f32 %v1278_v61, %v1201_v37  ;;  %vm5014_vm10 = vcmask 1042432   ;;  %v590_v52 = vadd.f32 %v558_v46, %v4280_v18  ;;  %v4697_v54 = vadd.f32 %v559_v39, %v4367_v0 }
 0x183   : > { %v881_v58 = vsel %vm5014_vm10, %v864_v41, %v799_v1  ;;  %v2390_v44 = vsel %vm2384_vm1, 2143289344, %v2773_v27  ;;  %vm2411_vm6 = vcmp.eq.f32.partialorder %v4570_v8, 0  ;;  %vm2412_vm11 = vcmp.eq.f32.partialorder %v4570_v8, 1065353216 }
 0x184   : > { %v989_v31 = vrot.slane %v881_v58, 1  ;;  %v1134_v6 = vrot.slane %v881_v58, 2  ;;  %v2391_v62 = vsel %vm2385_vm9, 0, %v2390_v44  ;;  %v1491_v45 = vadd.f32 %v1423_v29, %v1346_v55 }
 0x185   : > { %v1279_v34 = vrot.slane %v881_v58, 3  ;;  %v2775_v5 = vpop.eup %2774  ;;  %v2396_v18 = vsel %vm4681_vm15, 2139095040, %v2391_v62  ;;  %v1424_v60 = vrot.slane %v881_v58, 4  ;;  %v623_v3 = vrot.slane %v590_v52, 2 }
 0x186   : > { %v990_v19 = vsel %vm915_vm2, %v987_v48, %v989_v31  ;;  %v1135_v51 = vsel %vm5015_vm13, %v1132_v20, %v1134_v6  ;;  %v2400_v0 = vsel %vm2397_vm5, 2143289344, %v2396_v18  ;;  %v2434_v21 = vmul.f32 0.4, %v2775_v5 }
 0x187   : > { %v4709_v47 = vmul.f32 0.04, %v1491_v45  ;;  %v1057_v49 = vadd.f32 %v990_v19, %v4639_v4  ;;  %v2401_v12 = vsel %vm2386_vm3, 1065353216, %v2400_v0  ;;  %v702_v15 = vrot.slane %v590_v52, 6  ;;  %vm5020_vm3 = vmmov %vm5013_vm8 }
 0x188   : > { %v703_v14 = vrot.slane %v4697_v54, 6  ;;  %v1583_v38 = vadd.f32 %v2818_v13, %v2401_v12  ;;  %2780 = vpow2.f32 %v2434_v21  ;;  %v1280_v48 = vsel %vm5016_vm0, %v1277_v33, %v1279_v34  ;;  %vm5022_vm5 = vmmov %vm5020_vm3 }
 0x189   : > { %v2484_v11 = vand.u32 2147483647, %v4709_v47  ;;  %v2777_v53 = vpop.eup %2776  ;;  %vm4721_vm1 = vcmp.eq.f32.partialorder %v2406_v7, 2139095040  ;;  %vm2423_vm9 = vcmp.ne.f32.partialorder %v4570_v8, %v4570_v8  ;;  %v1202_v4 = vadd.f32 %v1135_v51, %v1057_v49  ;;  %vm5024_vm8 = vmmov %vm5016_vm0 }
 0x18a   : > { %v1615_v28 = vmul.f32 0.5, %v1583_v38  ;;  %v2416_v59 = vsel %vm2410_vm7, 2143289344, %v2777_v53  ;;  %v1425_v20 = vsel %vm5019_vm14, %v1422_v2, %v1424_v60  ;;  %v4735_v16 = vsel %vm5020_vm3, %v702_v15, %v703_v14  ;;  %vm5026_vm0 = vmmov %vm5020_vm3 }
 0x18b   : > { %2782 = vlog2.f32 %v2484_v11  ;;  %v2417_v36 = vsel %vm2411_vm6, 0, %v2416_v59  ;;  %v1347_v7 = vadd.f32 %v1280_v48, %v1202_v4  ;;  %vm5021_vm15 = vcmask 1040384   ;;  %vm5025_vm6 = vmmov %vm5019_vm14  ;;  %v2820_v4 = vld [vmem:[%s2881_s13 + $0xd0] sm:$0xff] }
 0x18c   : > { %v833_v33 = vsel %vm5021_vm15, %v623_v3, %v590_v52  ;;  %v2779_v50 = vpop.eup %2778  ;;  %1648 = vst.msk [vmem:[%s3343_s16 + $0xc0] sm:$0xff] %vm1623_vm4, %v1615_v28  ;;  %v2422_v22 = vsel %vm4721_vm1, 2139095040, %v2417_v36  ;;  %v992_v30 = vrot.slane %v4735_v16, 1  ;;  %v1137_v25 = vrot.slane %v4735_v16, 2  ;;  %vm5028_vm15 = vmmov %vm5023_vm12 }
 0x18d   : > { %v849_v26 = vsel %vm5022_vm5, %v833_v33, %v702_v15  ;;  %v2426_v63 = vsel %vm2423_vm9, 2143289344, %v2422_v22  ;;  %v2460_v2 = vmul.f32 0.4, %v2779_v50  ;;  %v1492_v61 = vadd.f32 %v1425_v20, %v1347_v7 }
 0x18e   : > { %v991_v32 = vrot.slane %v849_v26, 1  ;;  %v2427_v1 = vsel %vm2412_vm11, 1065353216, %v2426_v63  ;;  %v1136_v37 = vrot.slane %v849_v26, 2  ;;  %v1281_v46 = vrot.slane %v849_v26, 3 }
 0x18f   : > { %v1282_v39 = vrot.slane %v4735_v16, 3  ;;  %v1584_v29 = vadd.f32 %v2819_v23, %v2427_v1  ;;  %2784 = vpow2.f32 %v2460_v2  ;;  %v4752_v41 = vmul.f32 0.04, %v1492_v61 }
 0x190   : > { %v993_v27 = vsel %vm915_vm2, %v991_v32, %v992_v30  ;;  %v1138_v58 = vsel %vm5023_vm12, %v1136_v37, %v1137_v25  ;;  %v1426_v52 = vrot.slane %v849_v26, 4  ;;  %v1427_v62 = vrot.slane %v4735_v16, 4  ;;  %vm5029_vm12 = vmmov %vm5024_vm8 }
 0x191   : > { %v1058_v55 = vadd.f32 %v993_v27, %v849_v26  ;;  %v1616_v44 = vmul.f32 0.5, %v1584_v29  ;;  %v2510_v8 = vand.u32 2147483647, %v4752_v41  ;;  %v1283_v31 = vsel %vm5024_vm8, %v1281_v46, %v1282_v39 }
 0x192   : > { %vm2436_vm7 = vcmp.lt.f32.partialorder %v4625_v9, 0  ;;  %v768_v45 = vrot.slane %v4697_v54, 4  ;;  %v800_v34 = vrot.slane %v4697_v54, 2  ;;  %vm2437_vm10 = vcmp.eq.f32.partialorder %v4625_v9, 0 }
 0x193   : > { %v1203_v6 = vadd.f32 %v1138_v58, %v1058_v55  ;;  %1649 = vst.msk [vmem:[%s3343_s16 + $0xc8] sm:$0xff] %vm1623_vm4, %v1616_v44  ;;  %2786 = vlog2.f32 %v2510_v8  ;;  %v1428_v18 = vsel %vm5025_vm6, %v1426_v52, %v1427_v62  ;;  %vm2441_vm13 = vcmp.eq.f32.partialorder %v2432_v56, 2139095040 }
 0x194   : > { %v865_v51 = vsel %vm5026_vm0, %v703_v14, %v768_v45  ;;  %vm2449_vm11 = vcmp.ne.f32.partialorder %v4625_v9, %v4625_v9  ;;  %vm5027_vm1 = vcmask 1042432   ;;  %vm2438_vm9 = vcmp.eq.f32.partialorder %v4625_v9, 1065353216 }
 0x195   : > { %v1348_v5 = vadd.f32 %v1283_v31, %v1203_v6  ;;  %v2781_v19 = vpop.eup %2780  ;;  %v882_v21 = vsel %vm5027_vm1, %v865_v51, %v800_v34  ;;  %vm2462_vm14 = vcmp.lt.f32.partialorder %v4658_v17, 0  ;;  %vm2463_vm3 = vcmp.eq.f32.partialorder %v4658_v17, 0 }
 0x196   : > { %v2442_v60 = vsel %vm2436_vm7, 2143289344, %v2781_v19  ;;  %v994_v12 = vrot.slane %v882_v21, 1  ;;  %v1139_v3 = vrot.slane %v882_v21, 2  ;;  %v1284_v48 = vrot.slane %v882_v21, 3  ;;  %vm5030_vm7 = vmmov %vm5025_vm6 }
 0x197   : > { %v1493_v0 = vadd.f32 %v1428_v18, %v1348_v5  ;;  %v2443_v49 = vsel %vm2437_vm10, 0, %v2442_v60  ;;  %v1429_v59 = vrot.slane %v882_v21, 4  ;;  %vm2467_vm5 = vcmp.eq.f32.partialorder %v2458_v40, 2139095040 }
 0x198   : > { %v2783_v54 = vpop.eup %2782  ;;  %v2448_v15 = vsel %vm2441_vm13, 2139095040, %v2443_v49  ;;  %v995_v14 = vsel %vm915_vm2, %v992_v30, %v994_v12  ;;  %v1140_v28 = vsel %vm5028_vm15, %v1137_v25, %v1139_v3  ;;  %vm2475_vm2 = vcmp.ne.f32.partialorder %v4658_v17, %v4658_v17 }
 0x199   : > { %v2486_v13 = vmul.f32 0.4, %v2783_v54  ;;  %v4775_v38 = vmul.f32 0.04, %v1493_v0  ;;  %v2452_v56 = vsel %vm2449_vm11, 2143289344, %v2448_v15  ;;  %v1059_v36 = vadd.f32 %v995_v14, %v4735_v16 }
 0x19a   : > { %v2453_v53 = vsel %vm2438_vm9, 1065353216, %v2452_v56  ;;  %v1285_v50 = vsel %vm5029_vm12, %v1282_v39, %v1284_v48  ;;  %vm2464_vm8 = vcmp.eq.f32.partialorder %v4658_v17, 1065353216  ;;  %v1430_v30 = vsel %vm5030_vm7, %v1427_v62, %v1429_v59 }
 0x19b   : > { %2788 = vpow2.f32 %v2486_v13  ;;  %v2536_v57 = vand.u32 2147483647, %v4775_v38  ;;  %v1585_v9 = vadd.f32 %v2820_v4, %v2453_v53  ;;  %v1204_v26 = vadd.f32 %v1140_v28, %v1059_v36 }
 0x19c   : > { %v2785_v20 = vpop.eup %2784  ;;  %vm2488_vm10 = vcmp.lt.f32.partialorder %v4709_v47, 0  ;;  %vm2489_vm6 = vcmp.eq.f32.partialorder %v4709_v47, 0  ;;  %vm2493_vm13 = vcmp.eq.f32.partialorder %v2484_v11, 2139095040  ;;  %vm2501_vm0 = vcmp.ne.f32.partialorder %v4709_v47, %v4709_v47 }
 0x19d   : > { %2790 = vlog2.f32 %v2536_v57  ;;  %v1617_v7 = vmul.f32 0.5, %v1585_v9  ;;  %v2468_v33 = vsel %vm2462_vm14, 2143289344, %v2785_v20  ;;  %v1349_v16 = vadd.f32 %v1285_v50, %v1204_v26 }
 0x19e   : > { %v2469_v22 = vsel %vm2463_vm3, 0, %v2468_v33  ;;  %vm2490_vm11 = vcmp.eq.f32.partialorder %v4709_v47, 1065353216  ;;  %vm2514_vm1 = vcmp.lt.f32.partialorder %v4752_v41, 0  ;;  %vm2515_vm9 = vcmp.eq.f32.partialorder %v4752_v41, 0 }
 0x19f   : > { %1650 = vst.msk [vmem:[%s3343_s16 + $0xd0] sm:$0xff] %vm1623_vm4, %v1617_v7  ;;  %v2474_v40 = vsel %vm2467_vm5, 2139095040, %v2469_v22  ;;  %v1494_v1 = vadd.f32 %v1430_v30, %v1349_v16  ;;  %vm2519_vm14 = vcmp.eq.f32.partialorder %v2510_v8, 2139095040  ;;  %vm2527_vm3 = vcmp.ne.f32.partialorder %v4752_v41, %v4752_v41 }
 0x1a0   : > { %v2787_v25 = vpop.eup %2786  ;;  %v2478_v63 = vsel %vm2475_vm2, 2143289344, %v2474_v40  ;;  %vm2516_vm15 = vcmp.eq.f32.partialorder %v4752_v41, 1065353216  ;;  %vm2540_vm5 = vcmp.lt.f32.partialorder %v4775_v38, 0  ;;  %vm2541_vm2 = vcmp.eq.f32.partialorder %v4775_v38, 0 }
 0x1a1   : > { %v2479_v2 = vsel %vm2464_vm8, 1065353216, %v2478_v63  ;;  %v2512_v61 = vmul.f32 0.4, %v2787_v25  ;;  %v4796_v46 = vmul.f32 0.04, %v1494_v1  ;;  %vm2545_vm12 = vcmp.eq.f32.partialorder %v2536_v57, 2139095040 }
 0x1a2   : > { %v1586_v32 = vadd.f32 %v2479_v2, %v4240_v10  ;;  %vm2553_vm8 = vcmp.ne.f32.partialorder %v4775_v38, %v4775_v38  ;;  %vm2542_vm7 = vcmp.eq.f32.partialorder %v4775_v38, 1065353216 }
 0x1a3   : > { %2792 = vpow2.f32 %v2512_v61  ;;  %v2562_v17 = vand.u32 2147483647, %v4796_v46 }
 0x1a4   : > { %v1618_v37 = vmul.f32 0.5, %v1586_v32 }
 0x1a5   : > { %2794 = vlog2.f32 %v2562_v17 }
 0x1a6   : > { %1651 = vst.msk [vmem:[%s3343_s16 + $0xd8] sm:$0xff] %vm1623_vm4, %v1618_v37 }
 0x1a8   : > { %v2789_v39 = vpop.eup %2788 }
 0x1a9   : > { %v2494_v23 = vsel %vm2488_vm10, 2143289344, %v2789_v39  ;;  %vm2566_vm10 = vcmp.lt.f32.partialorder %v4796_v46, 0 }
 0x1aa   : > { %v2791_v10 = vpop.eup %2790  ;;  %v2495_v29 = vsel %vm2489_vm6, 0, %v2494_v23  ;;  %vm2567_vm6 = vcmp.eq.f32.partialorder %v4796_v46, 0 }
 0x1ab   : > { %v2500_v27 = vsel %vm2493_vm13, 2139095040, %v2495_v29  ;;  %v2538_v55 = vmul.f32 0.4, %v2791_v10  ;;  %vm2571_vm13 = vcmp.eq.f32.partialorder %v2562_v17, 2139095040 }
 0x1ac   : > { %v2504_v58 = vsel %vm2501_vm0, 2143289344, %v2500_v27  ;;  %vm2579_vm0 = vcmp.ne.f32.partialorder %v4796_v46, %v4796_v46 }
 0x1ad   : > { %v2505_v52 = vsel %vm2490_vm11, 1065353216, %v2504_v58  ;;  %2796 = vpow2.f32 %v2538_v55  ;;  %vm2568_vm11 = vcmp.eq.f32.partialorder %v4796_v46, 1065353216 }
 0x1ae   : > { %v1587_v44 = vadd.f32 %v2505_v52, %v4263_v42 }
 0x1b0   : > { %v1619_v11 = vmul.f32 0.5, %v1587_v44  ;;  %v2793_v31 = vpop.eup %2792 }
 0x1b1   : > { %v2520_v47 = vsel %vm2514_vm1, 2143289344, %v2793_v31 }
 0x1b2   : > { %1652 = vst.msk [vmem:[%s3343_s16 + $0xe0] sm:$0xff] %vm1623_vm4, %v1619_v11  ;;  %v2521_v6 = vsel %vm2515_vm9, 0, %v2520_v47  ;;  %v2795_v45 = vpop.eup %2794 }
 0x1b3   : > { %v2526_v42 = vsel %vm2519_vm14, 2139095040, %v2521_v6  ;;  %v2564_v18 = vmul.f32 0.4, %v2795_v45 }
 0x1b4   : > { %v2530_v62 = vsel %vm2527_vm3, 2143289344, %v2526_v42 }
 0x1b5   : > { %v2531_v34 = vsel %vm2516_vm15, 1065353216, %v2530_v62  ;;  %2798 = vpow2.f32 %v2564_v18 }
 0x1b6   : > { %v1588_v5 = vadd.f32 %v2531_v34, %v4275_v43 }
 0x1b8   : > { %v1620_v8 = vmul.f32 0.5, %v1588_v5 }
 0x1ba   : > { %v2797_v19 = vpop.eup %2796  ;;  %1653 = vst.msk [vmem:[%s3343_s16 + $0xe8] sm:$0xff] %vm1623_vm4, %v1620_v8 }
 0x1bb   : > { %v2546_v41 = vsel %vm2540_vm5, 2143289344, %v2797_v19 }
 0x1bc   : > { %v2547_v43 = vsel %vm2541_vm2, 0, %v2546_v41 }
 0x1bd   : > { %v2552_v51 = vsel %vm2545_vm12, 2139095040, %v2547_v43 }
 0x1be   : > { %v2556_v60 = vsel %vm2553_vm8, 2143289344, %v2552_v51 }
 0x1bf   : > { %v2557_v0 = vsel %vm2542_vm7, 1065353216, %v2556_v60 }
 0x1c0   : > { %v1589_v21 = vadd.f32 %v2557_v0, %v4354_v35 }
 0x1c2   : > { %v1621_v54 = vmul.f32 0.5, %v1589_v21  ;;  %v2799_v49 = vpop.eup %2798 }
 0x1c3   : > { %v2572_v12 = vsel %vm2566_vm10, 2143289344, %v2799_v49 }
 0x1c4   : > { %1654 = vst.msk [vmem:[%s3343_s16 + $0xf0] sm:$0xff] %vm1623_vm4, %v1621_v54  ;;  %v2573_v3 = vsel %vm2567_vm6, 0, %v2572_v12 }
 0x1c5   : > { %v2578_v15 = vsel %vm2571_vm13, 2139095040, %v2573_v3 }
 0x1c6   : > { %v2582_v13 = vsel %vm2579_vm0, 2143289344, %v2578_v15 }
 0x1c7   : > { %v2583_v35 = vsel %vm2568_vm11, 1065353216, %v2582_v13 }
 0x1c8   : > { %v1590_v38 = vadd.f32 %v2583_v35, %v4391_v24 }
 0x1ca   : > { %v1622_v56 = vmul.f32 0.5, %v1590_v38 }
 0x1cc   : > { %1655 = vst.msk [vmem:[%s3343_s16 + $0xf8] sm:$0xff] %vm1623_vm4, %v1622_v56 }
 0x1cd PF: > { %s11_s8 = sadd.s32 1, %s2843_s8   ;;  %s5031_s6 = smov %s2839_s7 }
 0x1ce   : > { %p8_p5 = scmp.ge.s32.totalorder %s11_s8, 4   ;;  %s5032_s7 = smov %s5034_s9 }
 0x1d0   :  { %10 = sbr.rel (!%p8_p5) target bundleno = 2 (0x2), region = 54 }

</bundles_post_ra>
